<compile_context>
chip_gen: v6e
topology: v6e:2x2x1
jax: 0.10.0
libtpu: 0.0.40
codegen_flags: <defaults>
</compile_context>

<pallas_src>
import functools

import jax
import jax.numpy as jnp
from jax.experimental import pallas as pl
from jax.experimental.pallas import tpu as pltpu


# --------------------------------------------------------------------------
# Fused CBAM kernel (one grid step = one image).
#   x_ref   : (1, C, HW)  input image, lane-dense
#   w1,b1   : (Cr, C), (Cr, 1)   torch Linear(C -> Cr)
#   w2,b2   : (C, Cr), (C, 1)    torch Linear(Cr -> C)
#   cw_ref  : (98,) SMEM scalars = Conv2d(2,1,7).weight flattened (c, dh, dw)
#   mask_ref: (7, HW) 0/1 column-validity masks (one per horizontal tap dw)
#   o_ref   : (1, C, HW)  output
#   pad_ref : (2, HW + 6*W + 6) VMEM scratch: zero-padded flat pooled map
# --------------------------------------------------------------------------
def _cbam_kernel(H, W,
                 x_ref, w1_ref, b1_ref, w2_ref, b2_ref, cw_ref, mask_ref,
                 o_ref, pad_ref):
    HW = H * W
    PAD = 3 * W + 3                     # flat offset covering a (+/-3, +/-3) tap

    xv = x_ref[0]                       # (C, HW) float32
    C = xv.shape[0]

    # ---------------- ChannelGate: avg/max over HW, shared MLP, sigmoid -----
    avg = jnp.mean(xv, axis=1, keepdims=True)            # (C, 1)  lane reduce
    mx = jnp.max(xv, axis=1, keepdims=True)              # (C, 1)
    lane2 = jax.lax.broadcasted_iota(jnp.int32, (C, 2), 1)
    pooled = jnp.where(lane2 == 0, avg, mx)              # (C, 2) [avg | max]

    h = jnp.maximum(
        jnp.dot(w1_ref[...], pooled, preferred_element_type=jnp.float32)
        + b1_ref[...], 0.0)                               # (Cr, 2)
    att2 = jnp.dot(w2_ref[...], h,
                   preferred_element_type=jnp.float32) + b2_ref[...]   # (C, 2)
    att = jnp.sum(att2, axis=1, keepdims=True)            # (C, 1) avg+max paths
    xcg = xv * jax.nn.sigmoid(att)                        # (C, HW) lane bcast

    # ---------------- ChannelPool -> zero-padded flat map in VMEM scratch ---
    pad_ref[...] = jnp.zeros(pad_ref.shape, pad_ref.dtype)
    pad_ref[0:1, PAD:PAD + HW] = jnp.max(xcg, axis=0, keepdims=True)   # max  ch
    pad_ref[1:2, PAD:PAD + HW] = jnp.mean(xcg, axis=0, keepdims=True)  # mean ch

    # ---------------- SpatialGate: 7x7 conv in flat (lane-dense) space ------
    # tap (dh, dw) is a constant flat shift s = (dh-3)*W + (dw-3); rows that
    # fall outside [0, H) read the zero padding, columns that wrap to the
    # neighbouring row are killed by the per-dw mask.
    masks = [mask_ref[dw:dw + 1, :] for dw in range(7)]    # 7 x (1, HW)
    accs = [jnp.zeros((1, HW), jnp.float32) for _ in range(4)]
    k = 0
    for dh in range(7):
        base = PAD + (dh - 3) * W - 3
        for dw in range(7):
            sh = pad_ref[:, base + dw: base + dw + HW]     # (2, HW) shifted taps
            w_max = cw_ref[dh * 7 + dw]                    # scalar (max channel)
            w_mean = cw_ref[49 + dh * 7 + dw]              # scalar (mean channel)
            accs[k % 4] = accs[k % 4] + masks[dw] * (
                w_max * sh[0:1, :] + w_mean * sh[1:2, :])
            k += 1
    conv = (accs[0] + accs[1]) + (accs[2] + accs[3])       # (1, HW)

    # ---------------- apply spatial scale, lane-dense store -----------------
    o_ref[0] = (xcg * jax.nn.sigmoid(conv)).astype(o_ref.dtype)


# --------------------------------------------------------------------------
# Wrapper
# --------------------------------------------------------------------------
def cbam_forward(x, params):
    w1, b1, w2, b2, conv_w = params
    B, C, H, W = x.shape
    Cr = w1.shape[0]
    HW = H * W

    x2 = x.reshape(B, C, HW)
    b1c = b1.reshape(Cr, 1)
    b2c = b2.reshape(C, 1)
    cw_flat = conv_w.reshape(-1)                           # (2*7*7,) -> SMEM

    # column-validity masks for the 7 horizontal taps (tiny, host-side)
    col = jnp.tile(jnp.arange(W, dtype=jnp.int32), H)[None, :]      # (1, HW)
    dwv = jnp.arange(7, dtype=jnp.int32)[:, None]                   # (7, 1)
    shifted_col = col + dwv - 3
    dw_mask = ((shifted_col >= 0) & (shifted_col < W)).astype(jnp.float32)  # (7, HW)

    kernel = functools.partial(_cbam_kernel, H, W)

    out2 = pl.pallas_call(
        kernel,
        out_shape=jax.ShapeDtypeStruct((B, C, HW), x.dtype),
        grid_spec=pltpu.PrefetchScalarGridSpec(
            num_scalar_prefetch=0,
            grid=(B,),
            in_specs=[
                pl.BlockSpec((1, C, HW), lambda b: (b, 0, 0)),
                pl.BlockSpec((Cr, C), lambda b: (0, 0)),
                pl.BlockSpec((Cr, 1), lambda b: (0, 0)),
                pl.BlockSpec((C, Cr), lambda b: (0, 0)),
                pl.BlockSpec((C, 1), lambda b: (0, 0)),
                pl.BlockSpec(memory_space=pltpu.MemorySpace.SMEM),
                pl.BlockSpec((7, HW), lambda b: (0, 0)),
            ],
            out_specs=pl.BlockSpec((1, C, HW), lambda b: (b, 0, 0)),
            scratch_shapes=[pltpu.VMEM((2, HW + 6 * W + 6), jnp.float32)],
        ),
        compiler_params=pltpu.CompilerParams(
            dimension_semantics=("parallel",),
            vmem_limit_bytes=32 * 1024 * 1024),
    )(x2, w1, b1c, w2, b2c, cw_flat, dw_mask)

    return out2.reshape(B, C, H, W)


# --------------------------------------------------------------------------
# Pure-JAX reference (mirrors the PyTorch forward exactly) for verification.
# --------------------------------------------------------------------------
def cbam_reference(x, params):
    w1, b1, w2, b2, conv_w = params

    def mlp(p):                                  # p: (B, C)
        h = jnp.maximum(p @ w1.T + b1, 0.0)
        return h @ w2.T + b2

    avg = x.mean(axis=(2, 3))
    mx = x.max(axis=(2, 3))
    att = mlp(avg) + mlp(mx)
    xcg = x * jax.nn.sigmoid(att)[:, :, None, None]

    cp = jnp.stack([xcg.max(axis=1), xcg.mean(axis=1)], axis=1)   # (B,2,H,W)
    conv = jax.lax.conv_general_dilated(
        cp, conv_w, window_strides=(1, 1), padding=((3, 3), (3, 3)),
        dimension_numbers=("NCHW", "OIHW", "NCHW"))
    return xcg * jax.nn.sigmoid(conv)


if __name__ == "__main__":
    B, C, H, W = 2, 32, 16, 16          # gate_channels=32, reduction_ratio=16
    Cr = C // 16

    key = jax.random.PRNGKey(0)
    kx, k1, k2, k3, k4, k5 = jax.random.split(key, 6)
    x = jax.random.normal(kx, (B, C, H, W), jnp.float32)

    # deterministic synthetic parameters (PyTorch shape conventions)
    w1 = jax.random.normal(k1, (Cr, C), jnp.float32) * 0.2     # Linear(C, Cr).weight
    b1 = jax.random.normal(k2, (Cr,), jnp.float32) * 0.1       # Linear(C, Cr).bias
    w2 = jax.random.normal(k3, (C, Cr), jnp.float32) * 0.2     # Linear(Cr, C).weight
    b2 = jax.random.normal(k4, (C,), jnp.float32) * 0.1        # Linear(Cr, C).bias
    conv_w = jax.random.normal(k5, (1, 2, 7, 7), jnp.float32) * 0.2  # Conv2d(2,1,7,bias=False)

    params = (w1, b1, w2, b2, conv_w)
    out = jax.jit(cbam_forward)(x, params)
    out = jax.block_until_ready(out)

    ref = cbam_reference(x, params)
    assert out.shape == x.shape and out.dtype == x.dtype
    err = float(jnp.max(jnp.abs(out - ref)))
    assert err < 2e-4, f"max abs error {err}"
    print("KERNEL_OK")
</pallas_src>

<mosaic_0001>
module attributes {stable_mosaic.version = 11 : i64} {
  func.func @_cbam_kernel(%arg0: i32, %arg1: memref<1x32x256xf32, #tpu.memory_space<vmem>>, %arg2: memref<2x32xf32, #tpu.memory_space<vmem>>, %arg3: memref<2x1xf32, #tpu.memory_space<vmem>>, %arg4: memref<32x2xf32, #tpu.memory_space<vmem>>, %arg5: memref<32x1xf32, #tpu.memory_space<vmem>>, %arg6: memref<98xf32, #tpu.memory_space<smem>>, %arg7: memref<7x256xf32, #tpu.memory_space<vmem>>, %arg8: memref<1x32x256xf32, #tpu.memory_space<vmem>>, %arg9: memref<2x358xf32, #tpu.memory_space<vmem>>) attributes {dimension_semantics = [#tpu.dimension_semantics<parallel>], iteration_bounds = array<i64: 2>, scalar_prefetch = 0 : i64, scratch_operands = 1 : i64, tpu.core_type = #tpu.core_type<tc>, window_params = [{transform_indices = @transform_0, window_bounds = array<i64: 1, 32, 256>}, {pipeline_mode = #tpu.pipeline_mode<synchronous>, transform_indices = @transform_1, window_bounds = array<i64: 2, 32>}, {pipeline_mode = #tpu.pipeline_mode<synchronous>, transform_indices = @transform_2, window_bounds = array<i64: 2, 1>}, {pipeline_mode = #tpu.pipeline_mode<synchronous>, transform_indices = @transform_3, window_bounds = array<i64: 32, 2>}, {pipeline_mode = #tpu.pipeline_mode<synchronous>, transform_indices = @transform_4, window_bounds = array<i64: 32, 1>}, {transform_indices = @transform_5, window_bounds = array<i64: 98>}, {pipeline_mode = #tpu.pipeline_mode<synchronous>, transform_indices = @transform_6, window_bounds = array<i64: 7, 256>}, {transform_indices = @transform_7, window_bounds = array<i64: 1, 32, 256>}]} {
    %c0 = arith.constant 0 : index
    %c0_0 = arith.constant 0 : index
    %c0_1 = arith.constant 0 : index
    %0 = vector.load %arg1[%c0, %c0_0, %c0_1] : memref<1x32x256xf32, #tpu.memory_space<vmem>>, vector<1x32x256xf32>
    %1 = vector.shape_cast %0 : vector<1x32x256xf32> to vector<32x256xf32>
    %cst = arith.constant dense<0.000000e+00> : vector<32xf32>
    %2 = vector.multi_reduction <add>, %1, %cst [1] : vector<32x256xf32> to vector<32xf32>
    %3 = vector.shape_cast %2 : vector<32xf32> to vector<32x1xf32>
    %cst_2 = arith.constant 2.560000e+02 : f32
    %4 = vector.broadcast %cst_2 : f32 to vector<32x1xf32>
    %5 = arith.divf %3, %4 : vector<32x1xf32>
    %cst_3 = arith.constant dense<0xFF800000> : vector<32xf32>
    %6 = vector.multi_reduction <maximumf>, %1, %cst_3 [1] : vector<32x256xf32> to vector<32xf32>
    %7 = vector.shape_cast %6 : vector<32xf32> to vector<32x1xf32>
    %8 = tpu.iota {dimensions = array<i32: 1>} : vector<32x2xi32>
    %c0_i32 = arith.constant 0 : i32
    %9 = vector.broadcast %c0_i32 : i32 to vector<32x2xi32>
    %10 = arith.cmpi eq, %8, %9 : vector<32x2xi32>
    %11 = vector.shape_cast %5 : vector<32x1xf32> to vector<32x1xf32>
    %12 = vector.broadcast %11 : vector<32x1xf32> to vector<32x2xf32>
    %13 = vector.shape_cast %7 : vector<32x1xf32> to vector<32x1xf32>
    %14 = vector.broadcast %13 : vector<32x1xf32> to vector<32x2xf32>
    %15 = arith.select %10, %12, %14 : vector<32x2xi1>, vector<32x2xf32>
    %c0_4 = arith.constant 0 : index
    %c0_5 = arith.constant 0 : index
    %16 = vector.load %arg2[%c0_4, %c0_5] : memref<2x32xf32, #tpu.memory_space<vmem>>, vector<2x32xf32>
    %cst_6 = arith.constant dense<0.000000e+00> : vector<2x2xf32>
    %17 = tpu.matmul %16, %15, %cst_6 {dimension_numbers = #tpu.dot_dimension_numbers<[1], [0], [0], [1], [0, 0, 1, 1], [], []>} : vector<2x32xf32>, vector<32x2xf32>, vector<2x2xf32> -> vector<2x2xf32>
    %c0_7 = arith.constant 0 : index
    %c0_8 = arith.constant 0 : index
    %18 = vector.load %arg3[%c0_7, %c0_8] : memref<2x1xf32, #tpu.memory_space<vmem>>, vector<2x1xf32>
    %19 = vector.broadcast %18 : vector<2x1xf32> to vector<2x2xf32>
    %20 = arith.addf %17, %19 : vector<2x2xf32>
    %cst_9 = arith.constant 0.000000e+00 : f32
    %21 = vector.broadcast %cst_9 : f32 to vector<2x2xf32>
    %22 = arith.maximumf %20, %21 : vector<2x2xf32>
    %c0_10 = arith.constant 0 : index
    %c0_11 = arith.constant 0 : index
    %23 = vector.load %arg4[%c0_10, %c0_11] : memref<32x2xf32, #tpu.memory_space<vmem>>, vector<32x2xf32>
    %cst_12 = arith.constant dense<0.000000e+00> : vector<32x2xf32>
    %24 = tpu.matmul %23, %22, %cst_12 {dimension_numbers = #tpu.dot_dimension_numbers<[1], [0], [0], [1], [0, 0, 1, 1], [], []>} : vector<32x2xf32>, vector<2x2xf32>, vector<32x2xf32> -> vector<32x2xf32>
    %c0_13 = arith.constant 0 : index
    %c0_14 = arith.constant 0 : index
    %25 = vector.load %arg5[%c0_13, %c0_14] : memref<32x1xf32, #tpu.memory_space<vmem>>, vector<32x1xf32>
    %26 = vector.broadcast %25 : vector<32x1xf32> to vector<32x2xf32>
    %27 = arith.addf %24, %26 : vector<32x2xf32>
    %cst_15 = arith.constant dense<0.000000e+00> : vector<32xf32>
    %28 = vector.multi_reduction <add>, %27, %cst_15 [1] : vector<32x2xf32> to vector<32xf32>
    %29 = vector.shape_cast %28 : vector<32xf32> to vector<32x1xf32>
    %30 = arith.negf %29 : vector<32x1xf32>
    %31 = math.exp %30 : vector<32x1xf32>
    %cst_16 = arith.constant 1.000000e+00 : f32
    %32 = vector.broadcast %cst_16 : f32 to vector<32x1xf32>
    %33 = arith.addf %32, %31 : vector<32x1xf32>
    %34 = arith.divf %32, %33 : vector<32x1xf32>
    %35 = vector.broadcast %34 : vector<32x1xf32> to vector<32x256xf32>
    %36 = arith.mulf %1, %35 : vector<32x256xf32>
    %cst_17 = arith.constant 0.000000e+00 : f32
    %37 = vector.broadcast %cst_17 : f32 to vector<2x358xf32>
    %c0_18 = arith.constant 0 : index
    %c0_19 = arith.constant 0 : index
    %38 = vector.load %arg9[%c0_18, %c0_19] : memref<2x358xf32, #tpu.memory_space<vmem>>, vector<2x358xf32>
    tpu.vector_store %arg9[%c0_18, %c0_19], %37 {strides = array<i32>} : memref<2x358xf32, #tpu.memory_space<vmem>>, vector<2x358xf32>,
    %cst_20 = arith.constant dense<0xFF800000> : vector<256xf32>
    %39 = vector.multi_reduction <maximumf>, %36, %cst_20 [0] : vector<32x256xf32> to vector<256xf32>
    %40 = vector.shape_cast %39 : vector<256xf32> to vector<1x256xf32>
    %c0_21 = arith.constant 0 : index
    %c51 = arith.constant 51 : index
    %41 = vector.load %arg9[%c0_21, %c51] : memref<2x358xf32, #tpu.memory_space<vmem>>, vector<1x256xf32>
    tpu.vector_store %arg9[%c0_21, %c51], %40 {strides = array<i32>} : memref<2x358xf32, #tpu.memory_space<vmem>>, vector<1x256xf32>,
    %cst_22 = arith.constant dense<0.000000e+00> : vector<256xf32>
    %42 = vector.multi_reduction <add>, %36, %cst_22 [0] : vector<32x256xf32> to vector<256xf32>
    %43 = vector.shape_cast %42 : vector<256xf32> to vector<1x256xf32>
    %cst_23 = arith.constant 3.200000e+01 : f32
    %44 = vector.broadcast %cst_23 : f32 to vector<1x256xf32>
    %45 = arith.divf %43, %44 : vector<1x256xf32>
    %c1 = arith.constant 1 : index
    %c51_24 = arith.constant 51 : index
    %46 = vector.load %arg9[%c1, %c51_24] : memref<2x358xf32, #tpu.memory_space<vmem>>, vector<1x256xf32>
    tpu.vector_store %arg9[%c1, %c51_24], %45 {strides = array<i32>} : memref<2x358xf32, #tpu.memory_space<vmem>>, vector<1x256xf32>,
    %c0_25 = arith.constant 0 : index
    %c0_26 = arith.constant 0 : index
    %47 = vector.load %arg7[%c0_25, %c0_26] : memref<7x256xf32, #tpu.memory_space<vmem>>, vector<1x256xf32>
    %c1_27 = arith.constant 1 : index
    %c0_28 = arith.constant 0 : index
    %48 = vector.load %arg7[%c1_27, %c0_28] : memref<7x256xf32, #tpu.memory_space<vmem>>, vector<1x256xf32>
    %c2 = arith.constant 2 : index
    %c0_29 = arith.constant 0 : index
    %49 = vector.load %arg7[%c2, %c0_29] : memref<7x256xf32, #tpu.memory_space<vmem>>, vector<1x256xf32>
    %c3 = arith.constant 3 : index
    %c0_30 = arith.constant 0 : index
    %50 = vector.load %arg7[%c3, %c0_30] : memref<7x256xf32, #tpu.memory_space<vmem>>, vector<1x256xf32>
    %c4 = arith.constant 4 : index
    %c0_31 = arith.constant 0 : index
    %51 = vector.load %arg7[%c4, %c0_31] : memref<7x256xf32, #tpu.memory_space<vmem>>, vector<1x256xf32>
    %c5 = arith.constant 5 : index
    %c0_32 = arith.constant 0 : index
    %52 = vector.load %arg7[%c5, %c0_32] : memref<7x256xf32, #tpu.memory_space<vmem>>, vector<1x256xf32>
    %c6 = arith.constant 6 : index
    %c0_33 = arith.constant 0 : index
    %53 = vector.load %arg7[%c6, %c0_33] : memref<7x256xf32, #tpu.memory_space<vmem>>, vector<1x256xf32>
    %cst_34 = arith.constant 0.000000e+00 : f32
    %54 = vector.broadcast %cst_34 : f32 to vector<1x256xf32>
    %cst_35 = arith.constant 0.000000e+00 : f32
    %55 = vector.broadcast %cst_35 : f32 to vector<1x256xf32>
    %cst_36 = arith.constant 0.000000e+00 : f32
    %56 = vector.broadcast %cst_36 : f32 to vector<1x256xf32>
    %cst_37 = arith.constant 0.000000e+00 : f32
    %57 = vector.broadcast %cst_37 : f32 to vector<1x256xf32>
    %c0_38 = arith.constant 0 : index
    %c0_39 = arith.constant 0 : index
    %58 = vector.load %arg9[%c0_38, %c0_39] : memref<2x358xf32, #tpu.memory_space<vmem>>, vector<2x256xf32>
    %c0_40 = arith.constant 0 : index
    %59 = memref.load %arg6[%c0_40] : memref<98xf32, #tpu.memory_space<smem>>
    %c49 = arith.constant 49 : index
    %60 = memref.load %arg6[%c49] : memref<98xf32, #tpu.memory_space<smem>>
    %61 = vector.extract_strided_slice %58 {offsets = [0, 0], sizes = [1, 256], strides = [1, 1]} : vector<2x256xf32> to vector<1x256xf32>
    %62 = vector.broadcast %59 : f32 to vector<1x256xf32>
    %63 = arith.mulf %62, %61 : vector<1x256xf32>
    %64 = vector.extract_strided_slice %58 {offsets = [1, 0], sizes = [1, 256], strides = [1, 1]} : vector<2x256xf32> to vector<1x256xf32>
    %65 = vector.broadcast %60 : f32 to vector<1x256xf32>
    %66 = arith.mulf %65, %64 : vector<1x256xf32>
    %67 = arith.addf %63, %66 : vector<1x256xf32>
    %68 = arith.mulf %47, %67 : vector<1x256xf32>
    %69 = arith.addf %54, %68 : vector<1x256xf32>
    %c0_41 = arith.constant 0 : index
    %c1_42 = arith.constant 1 : index
    %70 = vector.load %arg9[%c0_41, %c1_42] : memref<2x358xf32, #tpu.memory_space<vmem>>, vector<2x256xf32>
    %c1_43 = arith.constant 1 : index
    %71 = memref.load %arg6[%c1_43] : memref<98xf32, #tpu.memory_space<smem>>
    %c50 = arith.constant 50 : index
    %72 = memref.load %arg6[%c50] : memref<98xf32, #tpu.memory_space<smem>>
    %73 = vector.extract_strided_slice %70 {offsets = [0, 0], sizes = [1, 256], strides = [1, 1]} : vector<2x256xf32> to vector<1x256xf32>
    %74 = vector.broadcast %71 : f32 to vector<1x256xf32>
    %75 = arith.mulf %74, %73 : vector<1x256xf32>
    %76 = vector.extract_strided_slice %70 {offsets = [1, 0], sizes = [1, 256], strides = [1, 1]} : vector<2x256xf32> to vector<1x256xf32>
    %77 = vector.broadcast %72 : f32 to vector<1x256xf32>
    %78 = arith.mulf %77, %76 : vector<1x256xf32>
    %79 = arith.addf %75, %78 : vector<1x256xf32>
    %80 = arith.mulf %48, %79 : vector<1x256xf32>
    %81 = arith.addf %55, %80 : vector<1x256xf32>
    %c0_44 = arith.constant 0 : index
    %c2_45 = arith.constant 2 : index
    %82 = vector.load %arg9[%c0_44, %c2_45] : memref<2x358xf32, #tpu.memory_space<vmem>>, vector<2x256xf32>
    %c2_46 = arith.constant 2 : index
    %83 = memref.load %arg6[%c2_46] : memref<98xf32, #tpu.memory_space<smem>>
    %c51_47 = arith.constant 51 : index
    %84 = memref.load %arg6[%c51_47] : memref<98xf32, #tpu.memory_space<smem>>
    %85 = vector.extract_strided_slice %82 {offsets = [0, 0], sizes = [1, 256], strides = [1, 1]} : vector<2x256xf32> to vector<1x256xf32>
    %86 = vector.broadcast %83 : f32 to vector<1x256xf32>
    %87 = arith.mulf %86, %85 : vector<1x256xf32>
    %88 = vector.extract_strided_slice %82 {offsets = [1, 0], sizes = [1, 256], strides = [1, 1]} : vector<2x256xf32> to vector<1x256xf32>
    %89 = vector.broadcast %84 : f32 to vector<1x256xf32>
    %90 = arith.mulf %89, %88 : vector<1x256xf32>
    %91 = arith.addf %87, %90 : vector<1x256xf32>
    %92 = arith.mulf %49, %91 : vector<1x256xf32>
    %93 = arith.addf %56, %92 : vector<1x256xf32>
    %c0_48 = arith.constant 0 : index
    %c3_49 = arith.constant 3 : index
    %94 = vector.load %arg9[%c0_48, %c3_49] : memref<2x358xf32, #tpu.memory_space<vmem>>, vector<2x256xf32>
    %c3_50 = arith.constant 3 : index
    %95 = memref.load %arg6[%c3_50] : memref<98xf32, #tpu.memory_space<smem>>
    %c52 = arith.constant 52 : index
    %96 = memref.load %arg6[%c52] : memref<98xf32, #tpu.memory_space<smem>>
    %97 = vector.extract_strided_slice %94 {offsets = [0, 0], sizes = [1, 256], strides = [1, 1]} : vector<2x256xf32> to vector<1x256xf32>
    %98 = vector.broadcast %95 : f32 to vector<1x256xf32>
    %99 = arith.mulf %98, %97 : vector<1x256xf32>
    %100 = vector.extract_strided_slice %94 {offsets = [1, 0], sizes = [1, 256], strides = [1, 1]} : vector<2x256xf32> to vector<1x256xf32>
    %101 = vector.broadcast %96 : f32 to vector<1x256xf32>
    %102 = arith.mulf %101, %100 : vector<1x256xf32>
    %103 = arith.addf %99, %102 : vector<1x256xf32>
    %104 = arith.mulf %50, %103 : vector<1x256xf32>
    %105 = arith.addf %57, %104 : vector<1x256xf32>
    %c0_51 = arith.constant 0 : index
    %c4_52 = arith.constant 4 : index
    %106 = vector.load %arg9[%c0_51, %c4_52] : memref<2x358xf32, #tpu.memory_space<vmem>>, vector<2x256xf32>
    %c4_53 = arith.constant 4 : index
    %107 = memref.load %arg6[%c4_53] : memref<98xf32, #tpu.memory_space<smem>>
    %c53 = arith.constant 53 : index
    %108 = memref.load %arg6[%c53] : memref<98xf32, #tpu.memory_space<smem>>
    %109 = vector.extract_strided_slice %106 {offsets = [0, 0], sizes = [1, 256], strides = [1, 1]} : vector<2x256xf32> to vector<1x256xf32>
    %110 = vector.broadcast %107 : f32 to vector<1x256xf32>
    %111 = arith.mulf %110, %109 : vector<1x256xf32>
    %112 = vector.extract_strided_slice %106 {offsets = [1, 0], sizes = [1, 256], strides = [1, 1]} : vector<2x256xf32> to vector<1x256xf32>
    %113 = vector.broadcast %108 : f32 to vector<1x256xf32>
    %114 = arith.mulf %113, %112 : vector<1x256xf32>
    %115 = arith.addf %111, %114 : vector<1x256xf32>
    %116 = arith.mulf %51, %115 : vector<1x256xf32>
    %117 = arith.addf %69, %116 : vector<1x256xf32>
    %c0_54 = arith.constant 0 : index
    %c5_55 = arith.constant 5 : index
    %118 = vector.load %arg9[%c0_54, %c5_55] : memref<2x358xf32, #tpu.memory_space<vmem>>, vector<2x256xf32>
    %c5_56 = arith.constant 5 : index
    %119 = memref.load %arg6[%c5_56] : memref<98xf32, #tpu.memory_space<smem>>
    %c54 = arith.constant 54 : index
    %120 = memref.load %arg6[%c54] : memref<98xf32, #tpu.memory_space<smem>>
    %121 = vector.extract_strided_slice %118 {offsets = [0, 0], sizes = [1, 256], strides = [1, 1]} : vector<2x256xf32> to vector<1x256xf32>
    %122 = vector.broadcast %119 : f32 to vector<1x256xf32>
    %123 = arith.mulf %122, %121 : vector<1x256xf32>
    %124 = vector.extract_strided_slice %118 {offsets = [1, 0], sizes = [1, 256], strides = [1, 1]} : vector<2x256xf32> to vector<1x256xf32>
    %125 = vector.broadcast %120 : f32 to vector<1x256xf32>
    %126 = arith.mulf %125, %124 : vector<1x256xf32>
    %127 = arith.addf %123, %126 : vector<1x256xf32>
    %128 = arith.mulf %52, %127 : vector<1x256xf32>
    %129 = arith.addf %81, %128 : vector<1x256xf32>
    %c0_57 = arith.constant 0 : index
    %c6_58 = arith.constant 6 : index
    %130 = vector.load %arg9[%c0_57, %c6_58] : memref<2x358xf32, #tpu.memory_space<vmem>>, vector<2x256xf32>
    %c6_59 = arith.constant 6 : index
    %131 = memref.load %arg6[%c6_59] : memref<98xf32, #tpu.memory_space<smem>>
    %c55 = arith.constant 55 : index
    %132 = memref.load %arg6[%c55] : memref<98xf32, #tpu.memory_space<smem>>
    %133 = vector.extract_strided_slice %130 {offsets = [0, 0], sizes = [1, 256], strides = [1, 1]} : vector<2x256xf32> to vector<1x256xf32>
    %134 = vector.broadcast %131 : f32 to vector<1x256xf32>
    %135 = arith.mulf %134, %133 : vector<1x256xf32>
    %136 = vector.extract_strided_slice %130 {offsets = [1, 0], sizes = [1, 256], strides = [1, 1]} : vector<2x256xf32> to vector<1x256xf32>
    %137 = vector.broadcast %132 : f32 to vector<1x256xf32>
    %138 = arith.mulf %137, %136 : vector<1x256xf32>
    %139 = arith.addf %135, %138 : vector<1x256xf32>
    %140 = arith.mulf %53, %139 : vector<1x256xf32>
    %141 = arith.addf %93, %140 : vector<1x256xf32>
    %c0_60 = arith.constant 0 : index
    %c16 = arith.constant 16 : index
    %142 = vector.load %arg9[%c0_60, %c16] : memref<2x358xf32, #tpu.memory_space<vmem>>, vector<2x256xf32>
    %c7 = arith.constant 7 : index
    %143 = memref.load %arg6[%c7] : memref<98xf32, #tpu.memory_space<smem>>
    %c56 = arith.constant 56 : index
    %144 = memref.load %arg6[%c56] : memref<98xf32, #tpu.memory_space<smem>>
    %145 = vector.extract_strided_slice %142 {offsets = [0, 0], sizes = [1, 256], strides = [1, 1]} : vector<2x256xf32> to vector<1x256xf32>
    %146 = vector.broadcast %143 : f32 to vector<1x256xf32>
    %147 = arith.mulf %146, %145 : vector<1x256xf32>
    %148 = vector.extract_strided_slice %142 {offsets = [1, 0], sizes = [1, 256], strides = [1, 1]} : vector<2x256xf32> to vector<1x256xf32>
    %149 = vector.broadcast %144 : f32 to vector<1x256xf32>
    %150 = arith.mulf %149, %148 : vector<1x256xf32>
    %151 = arith.addf %147, %150 : vector<1x256xf32>
    %152 = arith.mulf %47, %151 : vector<1x256xf32>
    %153 = arith.addf %105, %152 : vector<1x256xf32>
    %c0_61 = arith.constant 0 : index
    %c17 = arith.constant 17 : index
    %154 = vector.load %arg9[%c0_61, %c17] : memref<2x358xf32, #tpu.memory_space<vmem>>, vector<2x256xf32>
    %c8 = arith.constant 8 : index
    %155 = memref.load %arg6[%c8] : memref<98xf32, #tpu.memory_space<smem>>
    %c57 = arith.constant 57 : index
    %156 = memref.load %arg6[%c57] : memref<98xf32, #tpu.memory_space<smem>>
    %157 = vector.extract_strided_slice %154 {offsets = [0, 0], sizes = [1, 256], strides = [1, 1]} : vector<2x256xf32> to vector<1x256xf32>
    %158 = vector.broadcast %155 : f32 to vector<1x256xf32>
    %159 = arith.mulf %158, %157 : vector<1x256xf32>
    %160 = vector.extract_strided_slice %154 {offsets = [1, 0], sizes = [1, 256], strides = [1, 1]} : vector<2x256xf32> to vector<1x256xf32>
    %161 = vector.broadcast %156 : f32 to vector<1x256xf32>
    %162 = arith.mulf %161, %160 : vector<1x256xf32>
    %163 = arith.addf %159, %162 : vector<1x256xf32>
    %164 = arith.mulf %48, %163 : vector<1x256xf32>
    %165 = arith.addf %117, %164 : vector<1x256xf32>
    %c0_62 = arith.constant 0 : index
    %c18 = arith.constant 18 : index
    %166 = vector.load %arg9[%c0_62, %c18] : memref<2x358xf32, #tpu.memory_space<vmem>>, vector<2x256xf32>
    %c9 = arith.constant 9 : index
    %167 = memref.load %arg6[%c9] : memref<98xf32, #tpu.memory_space<smem>>
    %c58 = arith.constant 58 : index
    %168 = memref.load %arg6[%c58] : memref<98xf32, #tpu.memory_space<smem>>
    %169 = vector.extract_strided_slice %166 {offsets = [0, 0], sizes = [1, 256], strides = [1, 1]} : vector<2x256xf32> to vector<1x256xf32>
    %170 = vector.broadcast %167 : f32 to vector<1x256xf32>
    %171 = arith.mulf %170, %169 : vector<1x256xf32>
    %172 = vector.extract_strided_slice %166 {offsets = [1, 0], sizes = [1, 256], strides = [1, 1]} : vector<2x256xf32> to vector<1x256xf32>
    %173 = vector.broadcast %168 : f32 to vector<1x256xf32>
    %174 = arith.mulf %173, %172 : vector<1x256xf32>
    %175 = arith.addf %171, %174 : vector<1x256xf32>
    %176 = arith.mulf %49, %175 : vector<1x256xf32>
    %177 = arith.addf %129, %176 : vector<1x256xf32>
    %c0_63 = arith.constant 0 : index
    %c19 = arith.constant 19 : index
    %178 = vector.load %arg9[%c0_63, %c19] : memref<2x358xf32, #tpu.memory_space<vmem>>, vector<2x256xf32>
    %c10 = arith.constant 10 : index
    %179 = memref.load %arg6[%c10] : memref<98xf32, #tpu.memory_space<smem>>
    %c59 = arith.constant 59 : index
    %180 = memref.load %arg6[%c59] : memref<98xf32, #tpu.memory_space<smem>>
    %181 = vector.extract_strided_slice %178 {offsets = [0, 0], sizes = [1, 256], strides = [1, 1]} : vector<2x256xf32> to vector<1x256xf32>
    %182 = vector.broadcast %179 : f32 to vector<1x256xf32>
    %183 = arith.mulf %182, %181 : vector<1x256xf32>
    %184 = vector.extract_strided_slice %178 {offsets = [1, 0], sizes = [1, 256], strides = [1, 1]} : vector<2x256xf32> to vector<1x256xf32>
    %185 = vector.broadcast %180 : f32 to vector<1x256xf32>
    %186 = arith.mulf %185, %184 : vector<1x256xf32>
    %187 = arith.addf %183, %186 : vector<1x256xf32>
    %188 = arith.mulf %50, %187 : vector<1x256xf32>
    %189 = arith.addf %141, %188 : vector<1x256xf32>
    %c0_64 = arith.constant 0 : index
    %c20 = arith.constant 20 : index
    %190 = vector.load %arg9[%c0_64, %c20] : memref<2x358xf32, #tpu.memory_space<vmem>>, vector<2x256xf32>
    %c11 = arith.constant 11 : index
    %191 = memref.load %arg6[%c11] : memref<98xf32, #tpu.memory_space<smem>>
    %c60 = arith.constant 60 : index
    %192 = memref.load %arg6[%c60] : memref<98xf32, #tpu.memory_space<smem>>
    %193 = vector.extract_strided_slice %190 {offsets = [0, 0], sizes = [1, 256], strides = [1, 1]} : vector<2x256xf32> to vector<1x256xf32>
    %194 = vector.broadcast %191 : f32 to vector<1x256xf32>
    %195 = arith.mulf %194, %193 : vector<1x256xf32>
    %196 = vector.extract_strided_slice %190 {offsets = [1, 0], sizes = [1, 256], strides = [1, 1]} : vector<2x256xf32> to vector<1x256xf32>
    %197 = vector.broadcast %192 : f32 to vector<1x256xf32>
    %198 = arith.mulf %197, %196 : vector<1x256xf32>
    %199 = arith.addf %195, %198 : vector<1x256xf32>
    %200 = arith.mulf %51, %199 : vector<1x256xf32>
    %201 = arith.addf %153, %200 : vector<1x256xf32>
    %c0_65 = arith.constant 0 : index
    %c21 = arith.constant 21 : index
    %202 = vector.load %arg9[%c0_65, %c21] : memref<2x358xf32, #tpu.memory_space<vmem>>, vector<2x256xf32>
    %c12 = arith.constant 12 : index
    %203 = memref.load %arg6[%c12] : memref<98xf32, #tpu.memory_space<smem>>
    %c61 = arith.constant 61 : index
    %204 = memref.load %arg6[%c61] : memref<98xf32, #tpu.memory_space<smem>>
    %205 = vector.extract_strided_slice %202 {offsets = [0, 0], sizes = [1, 256], strides = [1, 1]} : vector<2x256xf32> to vector<1x256xf32>
    %206 = vector.broadcast %203 : f32 to vector<1x256xf32>
    %207 = arith.mulf %206, %205 : vector<1x256xf32>
    %208 = vector.extract_strided_slice %202 {offsets = [1, 0], sizes = [1, 256], strides = [1, 1]} : vector<2x256xf32> to vector<1x256xf32>
    %209 = vector.broadcast %204 : f32 to vector<1x256xf32>
    %210 = arith.mulf %209, %208 : vector<1x256xf32>
    %211 = arith.addf %207, %210 : vector<1x256xf32>
    %212 = arith.mulf %52, %211 : vector<1x256xf32>
    %213 = arith.addf %165, %212 : vector<1x256xf32>
    %c0_66 = arith.constant 0 : index
    %c22 = arith.constant 22 : index
    %214 = vector.load %arg9[%c0_66, %c22] : memref<2x358xf32, #tpu.memory_space<vmem>>, vector<2x256xf32>
    %c13 = arith.constant 13 : index
    %215 = memref.load %arg6[%c13] : memref<98xf32, #tpu.memory_space<smem>>
    %c62 = arith.constant 62 : index
    %216 = memref.load %arg6[%c62] : memref<98xf32, #tpu.memory_space<smem>>
    %217 = vector.extract_strided_slice %214 {offsets = [0, 0], sizes = [1, 256], strides = [1, 1]} : vector<2x256xf32> to vector<1x256xf32>
    %218 = vector.broadcast %215 : f32 to vector<1x256xf32>
    %219 = arith.mulf %218, %217 : vector<1x256xf32>
    %220 = vector.extract_strided_slice %214 {offsets = [1, 0], sizes = [1, 256], strides = [1, 1]} : vector<2x256xf32> to vector<1x256xf32>
    %221 = vector.broadcast %216 : f32 to vector<1x256xf32>
    %222 = arith.mulf %221, %220 : vector<1x256xf32>
    %223 = arith.addf %219, %222 : vector<1x256xf32>
    %224 = arith.mulf %53, %223 : vector<1x256xf32>
    %225 = arith.addf %177, %224 : vector<1x256xf32>
    %c0_67 = arith.constant 0 : index
    %c32 = arith.constant 32 : index
    %226 = vector.load %arg9[%c0_67, %c32] : memref<2x358xf32, #tpu.memory_space<vmem>>, vector<2x256xf32>
    %c14 = arith.constant 14 : index
    %227 = memref.load %arg6[%c14] : memref<98xf32, #tpu.memory_space<smem>>
    %c63 = arith.constant 63 : index
    %228 = memref.load %arg6[%c63] : memref<98xf32, #tpu.memory_space<smem>>
    %229 = vector.extract_strided_slice %226 {offsets = [0, 0], sizes = [1, 256], strides = [1, 1]} : vector<2x256xf32> to vector<1x256xf32>
    %230 = vector.broadcast %227 : f32 to vector<1x256xf32>
    %231 = arith.mulf %230, %229 : vector<1x256xf32>
    %232 = vector.extract_strided_slice %226 {offsets = [1, 0], sizes = [1, 256], strides = [1, 1]} : vector<2x256xf32> to vector<1x256xf32>
    %233 = vector.broadcast %228 : f32 to vector<1x256xf32>
    %234 = arith.mulf %233, %232 : vector<1x256xf32>
    %235 = arith.addf %231, %234 : vector<1x256xf32>
    %236 = arith.mulf %47, %235 : vector<1x256xf32>
    %237 = arith.addf %189, %236 : vector<1x256xf32>
    %c0_68 = arith.constant 0 : index
    %c33 = arith.constant 33 : index
    %238 = vector.load %arg9[%c0_68, %c33] : memref<2x358xf32, #tpu.memory_space<vmem>>, vector<2x256xf32>
    %c15 = arith.constant 15 : index
    %239 = memref.load %arg6[%c15] : memref<98xf32, #tpu.memory_space<smem>>
    %c64 = arith.constant 64 : index
    %240 = memref.load %arg6[%c64] : memref<98xf32, #tpu.memory_space<smem>>
    %241 = vector.extract_strided_slice %238 {offsets = [0, 0], sizes = [1, 256], strides = [1, 1]} : vector<2x256xf32> to vector<1x256xf32>
    %242 = vector.broadcast %239 : f32 to vector<1x256xf32>
    %243 = arith.mulf %242, %241 : vector<1x256xf32>
    %244 = vector.extract_strided_slice %238 {offsets = [1, 0], sizes = [1, 256], strides = [1, 1]} : vector<2x256xf32> to vector<1x256xf32>
    %245 = vector.broadcast %240 : f32 to vector<1x256xf32>
    %246 = arith.mulf %245, %244 : vector<1x256xf32>
    %247 = arith.addf %243, %246 : vector<1x256xf32>
    %248 = arith.mulf %48, %247 : vector<1x256xf32>
    %249 = arith.addf %201, %248 : vector<1x256xf32>
    %c0_69 = arith.constant 0 : index
    %c34 = arith.constant 34 : index
    %250 = vector.load %arg9[%c0_69, %c34] : memref<2x358xf32, #tpu.memory_space<vmem>>, vector<2x256xf32>
    %c16_70 = arith.constant 16 : index
    %251 = memref.load %arg6[%c16_70] : memref<98xf32, #tpu.memory_space<smem>>
    %c65 = arith.constant 65 : index
    %252 = memref.load %arg6[%c65] : memref<98xf32, #tpu.memory_space<smem>>
    %253 = vector.extract_strided_slice %250 {offsets = [0, 0], sizes = [1, 256], strides = [1, 1]} : vector<2x256xf32> to vector<1x256xf32>
    %254 = vector.broadcast %251 : f32 to vector<1x256xf32>
    %255 = arith.mulf %254, %253 : vector<1x256xf32>
    %256 = vector.extract_strided_slice %250 {offsets = [1, 0], sizes = [1, 256], strides = [1, 1]} : vector<2x256xf32> to vector<1x256xf32>
    %257 = vector.broadcast %252 : f32 to vector<1x256xf32>
    %258 = arith.mulf %257, %256 : vector<1x256xf32>
    %259 = arith.addf %255, %258 : vector<1x256xf32>
    %260 = arith.mulf %49, %259 : vector<1x256xf32>
    %261 = arith.addf %213, %260 : vector<1x256xf32>
    %c0_71 = arith.constant 0 : index
    %c35 = arith.constant 35 : index
    %262 = vector.load %arg9[%c0_71, %c35] : memref<2x358xf32, #tpu.memory_space<vmem>>, vector<2x256xf32>
    %c17_72 = arith.constant 17 : index
    %263 = memref.load %arg6[%c17_72] : memref<98xf32, #tpu.memory_space<smem>>
    %c66 = arith.constant 66 : index
    %264 = memref.load %arg6[%c66] : memref<98xf32, #tpu.memory_space<smem>>
    %265 = vector.extract_strided_slice %262 {offsets = [0, 0], sizes = [1, 256], strides = [1, 1]} : vector<2x256xf32> to vector<1x256xf32>
    %266 = vector.broadcast %263 : f32 to vector<1x256xf32>
    %267 = arith.mulf %266, %265 : vector<1x256xf32>
    %268 = vector.extract_strided_slice %262 {offsets = [1, 0], sizes = [1, 256], strides = [1, 1]} : vector<2x256xf32> to vector<1x256xf32>
    %269 = vector.broadcast %264 : f32 to vector<1x256xf32>
    %270 = arith.mulf %269, %268 : vector<1x256xf32>
    %271 = arith.addf %267, %270 : vector<1x256xf32>
    %272 = arith.mulf %50, %271 : vector<1x256xf32>
    %273 = arith.addf %225, %272 : vector<1x256xf32>
    %c0_73 = arith.constant 0 : index
    %c36 = arith.constant 36 : index
    %274 = vector.load %arg9[%c0_73, %c36] : memref<2x358xf32, #tpu.memory_space<vmem>>, vector<2x256xf32>
    %c18_74 = arith.constant 18 : index
    %275 = memref.load %arg6[%c18_74] : memref<98xf32, #tpu.memory_space<smem>>
    %c67 = arith.constant 67 : index
    %276 = memref.load %arg6[%c67] : memref<98xf32, #tpu.memory_space<smem>>
    %277 = vector.extract_strided_slice %274 {offsets = [0, 0], sizes = [1, 256], strides = [1, 1]} : vector<2x256xf32> to vector<1x256xf32>
    %278 = vector.broadcast %275 : f32 to vector<1x256xf32>
    %279 = arith.mulf %278, %277 : vector<1x256xf32>
    %280 = vector.extract_strided_slice %274 {offsets = [1, 0], sizes = [1, 256], strides = [1, 1]} : vector<2x256xf32> to vector<1x256xf32>
    %281 = vector.broadcast %276 : f32 to vector<1x256xf32>
    %282 = arith.mulf %281, %280 : vector<1x256xf32>
    %283 = arith.addf %279, %282 : vector<1x256xf32>
    %284 = arith.mulf %51, %283 : vector<1x256xf32>
    %285 = arith.addf %237, %284 : vector<1x256xf32>
    %c0_75 = arith.constant 0 : index
    %c37 = arith.constant 37 : index
    %286 = vector.load %arg9[%c0_75, %c37] : memref<2x358xf32, #tpu.memory_space<vmem>>, vector<2x256xf32>
    %c19_76 = arith.constant 19 : index
    %287 = memref.load %arg6[%c19_76] : memref<98xf32, #tpu.memory_space<smem>>
    %c68 = arith.constant 68 : index
    %288 = memref.load %arg6[%c68] : memref<98xf32, #tpu.memory_space<smem>>
    %289 = vector.extract_strided_slice %286 {offsets = [0, 0], sizes = [1, 256], strides = [1, 1]} : vector<2x256xf32> to vector<1x256xf32>
    %290 = vector.broadcast %287 : f32 to vector<1x256xf32>
    %291 = arith.mulf %290, %289 : vector<1x256xf32>
    %292 = vector.extract_strided_slice %286 {offsets = [1, 0], sizes = [1, 256], strides = [1, 1]} : vector<2x256xf32> to vector<1x256xf32>
    %293 = vector.broadcast %288 : f32 to vector<1x256xf32>
    %294 = arith.mulf %293, %292 : vector<1x256xf32>
    %295 = arith.addf %291, %294 : vector<1x256xf32>
    %296 = arith.mulf %52, %295 : vector<1x256xf32>
    %297 = arith.addf %249, %296 : vector<1x256xf32>
    %c0_77 = arith.constant 0 : index
    %c38 = arith.constant 38 : index
    %298 = vector.load %arg9[%c0_77, %c38] : memref<2x358xf32, #tpu.memory_space<vmem>>, vector<2x256xf32>
    %c20_78 = arith.constant 20 : index
    %299 = memref.load %arg6[%c20_78] : memref<98xf32, #tpu.memory_space<smem>>
    %c69 = arith.constant 69 : index
    %300 = memref.load %arg6[%c69] : memref<98xf32, #tpu.memory_space<smem>>
    %301 = vector.extract_strided_slice %298 {offsets = [0, 0], sizes = [1, 256], strides = [1, 1]} : vector<2x256xf32> to vector<1x256xf32>
    %302 = vector.broadcast %299 : f32 to vector<1x256xf32>
    %303 = arith.mulf %302, %301 : vector<1x256xf32>
    %304 = vector.extract_strided_slice %298 {offsets = [1, 0], sizes = [1, 256], strides = [1, 1]} : vector<2x256xf32> to vector<1x256xf32>
    %305 = vector.broadcast %300 : f32 to vector<1x256xf32>
    %306 = arith.mulf %305, %304 : vector<1x256xf32>
    %307 = arith.addf %303, %306 : vector<1x256xf32>
    %308 = arith.mulf %53, %307 : vector<1x256xf32>
    %309 = arith.addf %261, %308 : vector<1x256xf32>
    %c0_79 = arith.constant 0 : index
    %c48 = arith.constant 48 : index
    %310 = vector.load %arg9[%c0_79, %c48] : memref<2x358xf32, #tpu.memory_space<vmem>>, vector<2x256xf32>
    %c21_80 = arith.constant 21 : index
    %311 = memref.load %arg6[%c21_80] : memref<98xf32, #tpu.memory_space<smem>>
    %c70 = arith.constant 70 : index
    %312 = memref.load %arg6[%c70] : memref<98xf32, #tpu.memory_space<smem>>
    %313 = vector.extract_strided_slice %310 {offsets = [0, 0], sizes = [1, 256], strides = [1, 1]} : vector<2x256xf32> to vector<1x256xf32>
    %314 = vector.broadcast %311 : f32 to vector<1x256xf32>
    %315 = arith.mulf %314, %313 : vector<1x256xf32>
    %316 = vector.extract_strided_slice %310 {offsets = [1, 0], sizes = [1, 256], strides = [1, 1]} : vector<2x256xf32> to vector<1x256xf32>
    %317 = vector.broadcast %312 : f32 to vector<1x256xf32>
    %318 = arith.mulf %317, %316 : vector<1x256xf32>
    %319 = arith.addf %315, %318 : vector<1x256xf32>
    %320 = arith.mulf %47, %319 : vector<1x256xf32>
    %321 = arith.addf %273, %320 : vector<1x256xf32>
    %c0_81 = arith.constant 0 : index
    %c49_82 = arith.constant 49 : index
    %322 = vector.load %arg9[%c0_81, %c49_82] : memref<2x358xf32, #tpu.memory_space<vmem>>, vector<2x256xf32>
    %c22_83 = arith.constant 22 : index
    %323 = memref.load %arg6[%c22_83] : memref<98xf32, #tpu.memory_space<smem>>
    %c71 = arith.constant 71 : index
    %324 = memref.load %arg6[%c71] : memref<98xf32, #tpu.memory_space<smem>>
    %325 = vector.extract_strided_slice %322 {offsets = [0, 0], sizes = [1, 256], strides = [1, 1]} : vector<2x256xf32> to vector<1x256xf32>
    %326 = vector.broadcast %323 : f32 to vector<1x256xf32>
    %327 = arith.mulf %326, %325 : vector<1x256xf32>
    %328 = vector.extract_strided_slice %322 {offsets = [1, 0], sizes = [1, 256], strides = [1, 1]} : vector<2x256xf32> to vector<1x256xf32>
    %329 = vector.broadcast %324 : f32 to vector<1x256xf32>
    %330 = arith.mulf %329, %328 : vector<1x256xf32>
    %331 = arith.addf %327, %330 : vector<1x256xf32>
    %332 = arith.mulf %48, %331 : vector<1x256xf32>
    %333 = arith.addf %285, %332 : vector<1x256xf32>
    %c0_84 = arith.constant 0 : index
    %c50_85 = arith.constant 50 : index
    %334 = vector.load %arg9[%c0_84, %c50_85] : memref<2x358xf32, #tpu.memory_space<vmem>>, vector<2x256xf32>
    %c23 = arith.constant 23 : index
    %335 = memref.load %arg6[%c23] : memref<98xf32, #tpu.memory_space<smem>>
    %c72 = arith.constant 72 : index
    %336 = memref.load %arg6[%c72] : memref<98xf32, #tpu.memory_space<smem>>
    %337 = vector.extract_strided_slice %334 {offsets = [0, 0], sizes = [1, 256], strides = [1, 1]} : vector<2x256xf32> to vector<1x256xf32>
    %338 = vector.broadcast %335 : f32 to vector<1x256xf32>
    %339 = arith.mulf %338, %337 : vector<1x256xf32>
    %340 = vector.extract_strided_slice %334 {offsets = [1, 0], sizes = [1, 256], strides = [1, 1]} : vector<2x256xf32> to vector<1x256xf32>
    %341 = vector.broadcast %336 : f32 to vector<1x256xf32>
    %342 = arith.mulf %341, %340 : vector<1x256xf32>
    %343 = arith.addf %339, %342 : vector<1x256xf32>
    %344 = arith.mulf %49, %343 : vector<1x256xf32>
    %345 = arith.addf %297, %344 : vector<1x256xf32>
    %c0_86 = arith.constant 0 : index
    %c51_87 = arith.constant 51 : index
    %346 = vector.load %arg9[%c0_86, %c51_87] : memref<2x358xf32, #tpu.memory_space<vmem>>, vector<2x256xf32>
    %c24 = arith.constant 24 : index
    %347 = memref.load %arg6[%c24] : memref<98xf32, #tpu.memory_space<smem>>
    %c73 = arith.constant 73 : index
    %348 = memref.load %arg6[%c73] : memref<98xf32, #tpu.memory_space<smem>>
    %349 = vector.extract_strided_slice %346 {offsets = [0, 0], sizes = [1, 256], strides = [1, 1]} : vector<2x256xf32> to vector<1x256xf32>
    %350 = vector.broadcast %347 : f32 to vector<1x256xf32>
    %351 = arith.mulf %350, %349 : vector<1x256xf32>
    %352 = vector.extract_strided_slice %346 {offsets = [1, 0], sizes = [1, 256], strides = [1, 1]} : vector<2x256xf32> to vector<1x256xf32>
    %353 = vector.broadcast %348 : f32 to vector<1x256xf32>
    %354 = arith.mulf %353, %352 : vector<1x256xf32>
    %355 = arith.addf %351, %354 : vector<1x256xf32>
    %356 = arith.mulf %50, %355 : vector<1x256xf32>
    %357 = arith.addf %309, %356 : vector<1x256xf32>
    %c0_88 = arith.constant 0 : index
    %c52_89 = arith.constant 52 : index
    %358 = vector.load %arg9[%c0_88, %c52_89] : memref<2x358xf32, #tpu.memory_space<vmem>>, vector<2x256xf32>
    %c25 = arith.constant 25 : index
    %359 = memref.load %arg6[%c25] : memref<98xf32, #tpu.memory_space<smem>>
    %c74 = arith.constant 74 : index
    %360 = memref.load %arg6[%c74] : memref<98xf32, #tpu.memory_space<smem>>
    %361 = vector.extract_strided_slice %358 {offsets = [0, 0], sizes = [1, 256], strides = [1, 1]} : vector<2x256xf32> to vector<1x256xf32>
    %362 = vector.broadcast %359 : f32 to vector<1x256xf32>
    %363 = arith.mulf %362, %361 : vector<1x256xf32>
    %364 = vector.extract_strided_slice %358 {offsets = [1, 0], sizes = [1, 256], strides = [1, 1]} : vector<2x256xf32> to vector<1x256xf32>
    %365 = vector.broadcast %360 : f32 to vector<1x256xf32>
    %366 = arith.mulf %365, %364 : vector<1x256xf32>
    %367 = arith.addf %363, %366 : vector<1x256xf32>
    %368 = arith.mulf %51, %367 : vector<1x256xf32>
    %369 = arith.addf %321, %368 : vector<1x256xf32>
    %c0_90 = arith.constant 0 : index
    %c53_91 = arith.constant 53 : index
    %370 = vector.load %arg9[%c0_90, %c53_91] : memref<2x358xf32, #tpu.memory_space<vmem>>, vector<2x256xf32>
    %c26 = arith.constant 26 : index
    %371 = memref.load %arg6[%c26] : memref<98xf32, #tpu.memory_space<smem>>
    %c75 = arith.constant 75 : index
    %372 = memref.load %arg6[%c75] : memref<98xf32, #tpu.memory_space<smem>>
    %373 = vector.extract_strided_slice %370 {offsets = [0, 0], sizes = [1, 256], strides = [1, 1]} : vector<2x256xf32> to vector<1x256xf32>
    %374 = vector.broadcast %371 : f32 to vector<1x256xf32>
    %375 = arith.mulf %374, %373 : vector<1x256xf32>
    %376 = vector.extract_strided_slice %370 {offsets = [1, 0], sizes = [1, 256], strides = [1, 1]} : vector<2x256xf32> to vector<1x256xf32>
    %377 = vector.broadcast %372 : f32 to vector<1x256xf32>
    %378 = arith.mulf %377, %376 : vector<1x256xf32>
    %379 = arith.addf %375, %378 : vector<1x256xf32>
    %380 = arith.mulf %52, %379 : vector<1x256xf32>
    %381 = arith.addf %333, %380 : vector<1x256xf32>
    %c0_92 = arith.constant 0 : index
    %c54_93 = arith.constant 54 : index
    %382 = vector.load %arg9[%c0_92, %c54_93] : memref<2x358xf32, #tpu.memory_space<vmem>>, vector<2x256xf32>
    %c27 = arith.constant 27 : index
    %383 = memref.load %arg6[%c27] : memref<98xf32, #tpu.memory_space<smem>>
    %c76 = arith.constant 76 : index
    %384 = memref.load %arg6[%c76] : memref<98xf32, #tpu.memory_space<smem>>
    %385 = vector.extract_strided_slice %382 {offsets = [0, 0], sizes = [1, 256], strides = [1, 1]} : vector<2x256xf32> to vector<1x256xf32>
    %386 = vector.broadcast %383 : f32 to vector<1x256xf32>
    %387 = arith.mulf %386, %385 : vector<1x256xf32>
    %388 = vector.extract_strided_slice %382 {offsets = [1, 0], sizes = [1, 256], strides = [1, 1]} : vector<2x256xf32> to vector<1x256xf32>
    %389 = vector.broadcast %384 : f32 to vector<1x256xf32>
    %390 = arith.mulf %389, %388 : vector<1x256xf32>
    %391 = arith.addf %387, %390 : vector<1x256xf32>
    %392 = arith.mulf %53, %391 : vector<1x256xf32>
    %393 = arith.addf %345, %392 : vector<1x256xf32>
    %c0_94 = arith.constant 0 : index
    %c64_95 = arith.constant 64 : index
    %394 = vector.load %arg9[%c0_94, %c64_95] : memref<2x358xf32, #tpu.memory_space<vmem>>, vector<2x256xf32>
    %c28 = arith.constant 28 : index
    %395 = memref.load %arg6[%c28] : memref<98xf32, #tpu.memory_space<smem>>
    %c77 = arith.constant 77 : index
    %396 = memref.load %arg6[%c77] : memref<98xf32, #tpu.memory_space<smem>>
    %397 = vector.extract_strided_slice %394 {offsets = [0, 0], sizes = [1, 256], strides = [1, 1]} : vector<2x256xf32> to vector<1x256xf32>
    %398 = vector.broadcast %395 : f32 to vector<1x256xf32>
    %399 = arith.mulf %398, %397 : vector<1x256xf32>
    %400 = vector.extract_strided_slice %394 {offsets = [1, 0], sizes = [1, 256], strides = [1, 1]} : vector<2x256xf32> to vector<1x256xf32>
    %401 = vector.broadcast %396 : f32 to vector<1x256xf32>
    %402 = arith.mulf %401, %400 : vector<1x256xf32>
    %403 = arith.addf %399, %402 : vector<1x256xf32>
    %404 = arith.mulf %47, %403 : vector<1x256xf32>
    %405 = arith.addf %357, %404 : vector<1x256xf32>
    %c0_96 = arith.constant 0 : index
    %c65_97 = arith.constant 65 : index
    %406 = vector.load %arg9[%c0_96, %c65_97] : memref<2x358xf32, #tpu.memory_space<vmem>>, vector<2x256xf32>
    %c29 = arith.constant 29 : index
    %407 = memref.load %arg6[%c29] : memref<98xf32, #tpu.memory_space<smem>>
    %c78 = arith.constant 78 : index
    %408 = memref.load %arg6[%c78] : memref<98xf32, #tpu.memory_space<smem>>
    %409 = vector.extract_strided_slice %406 {offsets = [0, 0], sizes = [1, 256], strides = [1, 1]} : vector<2x256xf32> to vector<1x256xf32>
    %410 = vector.broadcast %407 : f32 to vector<1x256xf32>
    %411 = arith.mulf %410, %409 : vector<1x256xf32>
    %412 = vector.extract_strided_slice %406 {offsets = [1, 0], sizes = [1, 256], strides = [1, 1]} : vector<2x256xf32> to vector<1x256xf32>
    %413 = vector.broadcast %408 : f32 to vector<1x256xf32>
    %414 = arith.mulf %413, %412 : vector<1x256xf32>
    %415 = arith.addf %411, %414 : vector<1x256xf32>
    %416 = arith.mulf %48, %415 : vector<1x256xf32>
    %417 = arith.addf %369, %416 : vector<1x256xf32>
    %c0_98 = arith.constant 0 : index
    %c66_99 = arith.constant 66 : index
    %418 = vector.load %arg9[%c0_98, %c66_99] : memref<2x358xf32, #tpu.memory_space<vmem>>, vector<2x256xf32>
    %c30 = arith.constant 30 : index
    %419 = memref.load %arg6[%c30] : memref<98xf32, #tpu.memory_space<smem>>
    %c79 = arith.constant 79 : index
    %420 = memref.load %arg6[%c79] : memref<98xf32, #tpu.memory_space<smem>>
    %421 = vector.extract_strided_slice %418 {offsets = [0, 0], sizes = [1, 256], strides = [1, 1]} : vector<2x256xf32> to vector<1x256xf32>
    %422 = vector.broadcast %419 : f32 to vector<1x256xf32>
    %423 = arith.mulf %422, %421 : vector<1x256xf32>
    %424 = vector.extract_strided_slice %418 {offsets = [1, 0], sizes = [1, 256], strides = [1, 1]} : vector<2x256xf32> to vector<1x256xf32>
    %425 = vector.broadcast %420 : f32 to vector<1x256xf32>
    %426 = arith.mulf %425, %424 : vector<1x256xf32>
    %427 = arith.addf %423, %426 : vector<1x256xf32>
    %428 = arith.mulf %49, %427 : vector<1x256xf32>
    %429 = arith.addf %381, %428 : vector<1x256xf32>
    %c0_100 = arith.constant 0 : index
    %c67_101 = arith.constant 67 : index
    %430 = vector.load %arg9[%c0_100, %c67_101] : memref<2x358xf32, #tpu.memory_space<vmem>>, vector<2x256xf32>
    %c31 = arith.constant 31 : index
    %431 = memref.load %arg6[%c31] : memref<98xf32, #tpu.memory_space<smem>>
    %c80 = arith.constant 80 : index
    %432 = memref.load %arg6[%c80] : memref<98xf32, #tpu.memory_space<smem>>
    %433 = vector.extract_strided_slice %430 {offsets = [0, 0], sizes = [1, 256], strides = [1, 1]} : vector<2x256xf32> to vector<1x256xf32>
    %434 = vector.broadcast %431 : f32 to vector<1x256xf32>
    %435 = arith.mulf %434, %433 : vector<1x256xf32>
    %436 = vector.extract_strided_slice %430 {offsets = [1, 0], sizes = [1, 256], strides = [1, 1]} : vector<2x256xf32> to vector<1x256xf32>
    %437 = vector.broadcast %432 : f32 to vector<1x256xf32>
    %438 = arith.mulf %437, %436 : vector<1x256xf32>
    %439 = arith.addf %435, %438 : vector<1x256xf32>
    %440 = arith.mulf %50, %439 : vector<1x256xf32>
    %441 = arith.addf %393, %440 : vector<1x256xf32>
    %c0_102 = arith.constant 0 : index
    %c68_103 = arith.constant 68 : index
    %442 = vector.load %arg9[%c0_102, %c68_103] : memref<2x358xf32, #tpu.memory_space<vmem>>, vector<2x256xf32>
    %c32_104 = arith.constant 32 : index
    %443 = memref.load %arg6[%c32_104] : memref<98xf32, #tpu.memory_space<smem>>
    %c81 = arith.constant 81 : index
    %444 = memref.load %arg6[%c81] : memref<98xf32, #tpu.memory_space<smem>>
    %445 = vector.extract_strided_slice %442 {offsets = [0, 0], sizes = [1, 256], strides = [1, 1]} : vector<2x256xf32> to vector<1x256xf32>
    %446 = vector.broadcast %443 : f32 to vector<1x256xf32>
    %447 = arith.mulf %446, %445 : vector<1x256xf32>
    %448 = vector.extract_strided_slice %442 {offsets = [1, 0], sizes = [1, 256], strides = [1, 1]} : vector<2x256xf32> to vector<1x256xf32>
    %449 = vector.broadcast %444 : f32 to vector<1x256xf32>
    %450 = arith.mulf %449, %448 : vector<1x256xf32>
    %451 = arith.addf %447, %450 : vector<1x256xf32>
    %452 = arith.mulf %51, %451 : vector<1x256xf32>
    %453 = arith.addf %405, %452 : vector<1x256xf32>
    %c0_105 = arith.constant 0 : index
    %c69_106 = arith.constant 69 : index
    %454 = vector.load %arg9[%c0_105, %c69_106] : memref<2x358xf32, #tpu.memory_space<vmem>>, vector<2x256xf32>
    %c33_107 = arith.constant 33 : index
    %455 = memref.load %arg6[%c33_107] : memref<98xf32, #tpu.memory_space<smem>>
    %c82 = arith.constant 82 : index
    %456 = memref.load %arg6[%c82] : memref<98xf32, #tpu.memory_space<smem>>
    %457 = vector.extract_strided_slice %454 {offsets = [0, 0], sizes = [1, 256], strides = [1, 1]} : vector<2x256xf32> to vector<1x256xf32>
    %458 = vector.broadcast %455 : f32 to vector<1x256xf32>
    %459 = arith.mulf %458, %457 : vector<1x256xf32>
    %460 = vector.extract_strided_slice %454 {offsets = [1, 0], sizes = [1, 256], strides = [1, 1]} : vector<2x256xf32> to vector<1x256xf32>
    %461 = vector.broadcast %456 : f32 to vector<1x256xf32>
    %462 = arith.mulf %461, %460 : vector<1x256xf32>
    %463 = arith.addf %459, %462 : vector<1x256xf32>
    %464 = arith.mulf %52, %463 : vector<1x256xf32>
    %465 = arith.addf %417, %464 : vector<1x256xf32>
    %c0_108 = arith.constant 0 : index
    %c70_109 = arith.constant 70 : index
    %466 = vector.load %arg9[%c0_108, %c70_109] : memref<2x358xf32, #tpu.memory_space<vmem>>, vector<2x256xf32>
    %c34_110 = arith.constant 34 : index
    %467 = memref.load %arg6[%c34_110] : memref<98xf32, #tpu.memory_space<smem>>
    %c83 = arith.constant 83 : index
    %468 = memref.load %arg6[%c83] : memref<98xf32, #tpu.memory_space<smem>>
    %469 = vector.extract_strided_slice %466 {offsets = [0, 0], sizes = [1, 256], strides = [1, 1]} : vector<2x256xf32> to vector<1x256xf32>
    %470 = vector.broadcast %467 : f32 to vector<1x256xf32>
    %471 = arith.mulf %470, %469 : vector<1x256xf32>
    %472 = vector.extract_strided_slice %466 {offsets = [1, 0], sizes = [1, 256], strides = [1, 1]} : vector<2x256xf32> to vector<1x256xf32>
    %473 = vector.broadcast %468 : f32 to vector<1x256xf32>
    %474 = arith.mulf %473, %472 : vector<1x256xf32>
    %475 = arith.addf %471, %474 : vector<1x256xf32>
    %476 = arith.mulf %53, %475 : vector<1x256xf32>
    %477 = arith.addf %429, %476 : vector<1x256xf32>
    %c0_111 = arith.constant 0 : index
    %c80_112 = arith.constant 80 : index
    %478 = vector.load %arg9[%c0_111, %c80_112] : memref<2x358xf32, #tpu.memory_space<vmem>>, vector<2x256xf32>
    %c35_113 = arith.constant 35 : index
    %479 = memref.load %arg6[%c35_113] : memref<98xf32, #tpu.memory_space<smem>>
    %c84 = arith.constant 84 : index
    %480 = memref.load %arg6[%c84] : memref<98xf32, #tpu.memory_space<smem>>
    %481 = vector.extract_strided_slice %478 {offsets = [0, 0], sizes = [1, 256], strides = [1, 1]} : vector<2x256xf32> to vector<1x256xf32>
    %482 = vector.broadcast %479 : f32 to vector<1x256xf32>
    %483 = arith.mulf %482, %481 : vector<1x256xf32>
    %484 = vector.extract_strided_slice %478 {offsets = [1, 0], sizes = [1, 256], strides = [1, 1]} : vector<2x256xf32> to vector<1x256xf32>
    %485 = vector.broadcast %480 : f32 to vector<1x256xf32>
    %486 = arith.mulf %485, %484 : vector<1x256xf32>
    %487 = arith.addf %483, %486 : vector<1x256xf32>
    %488 = arith.mulf %47, %487 : vector<1x256xf32>
    %489 = arith.addf %441, %488 : vector<1x256xf32>
    %c0_114 = arith.constant 0 : index
    %c81_115 = arith.constant 81 : index
    %490 = vector.load %arg9[%c0_114, %c81_115] : memref<2x358xf32, #tpu.memory_space<vmem>>, vector<2x256xf32>
    %c36_116 = arith.constant 36 : index
    %491 = memref.load %arg6[%c36_116] : memref<98xf32, #tpu.memory_space<smem>>
    %c85 = arith.constant 85 : index
    %492 = memref.load %arg6[%c85] : memref<98xf32, #tpu.memory_space<smem>>
    %493 = vector.extract_strided_slice %490 {offsets = [0, 0], sizes = [1, 256], strides = [1, 1]} : vector<2x256xf32> to vector<1x256xf32>
    %494 = vector.broadcast %491 : f32 to vector<1x256xf32>
    %495 = arith.mulf %494, %493 : vector<1x256xf32>
    %496 = vector.extract_strided_slice %490 {offsets = [1, 0], sizes = [1, 256], strides = [1, 1]} : vector<2x256xf32> to vector<1x256xf32>
    %497 = vector.broadcast %492 : f32 to vector<1x256xf32>
    %498 = arith.mulf %497, %496 : vector<1x256xf32>
    %499 = arith.addf %495, %498 : vector<1x256xf32>
    %500 = arith.mulf %48, %499 : vector<1x256xf32>
    %501 = arith.addf %453, %500 : vector<1x256xf32>
    %c0_117 = arith.constant 0 : index
    %c82_118 = arith.constant 82 : index
    %502 = vector.load %arg9[%c0_117, %c82_118] : memref<2x358xf32, #tpu.memory_space<vmem>>, vector<2x256xf32>
    %c37_119 = arith.constant 37 : index
    %503 = memref.load %arg6[%c37_119] : memref<98xf32, #tpu.memory_space<smem>>
    %c86 = arith.constant 86 : index
    %504 = memref.load %arg6[%c86] : memref<98xf32, #tpu.memory_space<smem>>
    %505 = vector.extract_strided_slice %502 {offsets = [0, 0], sizes = [1, 256], strides = [1, 1]} : vector<2x256xf32> to vector<1x256xf32>
    %506 = vector.broadcast %503 : f32 to vector<1x256xf32>
    %507 = arith.mulf %506, %505 : vector<1x256xf32>
    %508 = vector.extract_strided_slice %502 {offsets = [1, 0], sizes = [1, 256], strides = [1, 1]} : vector<2x256xf32> to vector<1x256xf32>
    %509 = vector.broadcast %504 : f32 to vector<1x256xf32>
    %510 = arith.mulf %509, %508 : vector<1x256xf32>
    %511 = arith.addf %507, %510 : vector<1x256xf32>
    %512 = arith.mulf %49, %511 : vector<1x256xf32>
    %513 = arith.addf %465, %512 : vector<1x256xf32>
    %c0_120 = arith.constant 0 : index
    %c83_121 = arith.constant 83 : index
    %514 = vector.load %arg9[%c0_120, %c83_121] : memref<2x358xf32, #tpu.memory_space<vmem>>, vector<2x256xf32>
    %c38_122 = arith.constant 38 : index
    %515 = memref.load %arg6[%c38_122] : memref<98xf32, #tpu.memory_space<smem>>
    %c87 = arith.constant 87 : index
    %516 = memref.load %arg6[%c87] : memref<98xf32, #tpu.memory_space<smem>>
    %517 = vector.extract_strided_slice %514 {offsets = [0, 0], sizes = [1, 256], strides = [1, 1]} : vector<2x256xf32> to vector<1x256xf32>
    %518 = vector.broadcast %515 : f32 to vector<1x256xf32>
    %519 = arith.mulf %518, %517 : vector<1x256xf32>
    %520 = vector.extract_strided_slice %514 {offsets = [1, 0], sizes = [1, 256], strides = [1, 1]} : vector<2x256xf32> to vector<1x256xf32>
    %521 = vector.broadcast %516 : f32 to vector<1x256xf32>
    %522 = arith.mulf %521, %520 : vector<1x256xf32>
    %523 = arith.addf %519, %522 : vector<1x256xf32>
    %524 = arith.mulf %50, %523 : vector<1x256xf32>
    %525 = arith.addf %477, %524 : vector<1x256xf32>
    %c0_123 = arith.constant 0 : index
    %c84_124 = arith.constant 84 : index
    %526 = vector.load %arg9[%c0_123, %c84_124] : memref<2x358xf32, #tpu.memory_space<vmem>>, vector<2x256xf32>
    %c39 = arith.constant 39 : index
    %527 = memref.load %arg6[%c39] : memref<98xf32, #tpu.memory_space<smem>>
    %c88 = arith.constant 88 : index
    %528 = memref.load %arg6[%c88] : memref<98xf32, #tpu.memory_space<smem>>
    %529 = vector.extract_strided_slice %526 {offsets = [0, 0], sizes = [1, 256], strides = [1, 1]} : vector<2x256xf32> to vector<1x256xf32>
    %530 = vector.broadcast %527 : f32 to vector<1x256xf32>
    %531 = arith.mulf %530, %529 : vector<1x256xf32>
    %532 = vector.extract_strided_slice %526 {offsets = [1, 0], sizes = [1, 256], strides = [1, 1]} : vector<2x256xf32> to vector<1x256xf32>
    %533 = vector.broadcast %528 : f32 to vector<1x256xf32>
    %534 = arith.mulf %533, %532 : vector<1x256xf32>
    %535 = arith.addf %531, %534 : vector<1x256xf32>
    %536 = arith.mulf %51, %535 : vector<1x256xf32>
    %537 = arith.addf %489, %536 : vector<1x256xf32>
    %c0_125 = arith.constant 0 : index
    %c85_126 = arith.constant 85 : index
    %538 = vector.load %arg9[%c0_125, %c85_126] : memref<2x358xf32, #tpu.memory_space<vmem>>, vector<2x256xf32>
    %c40 = arith.constant 40 : index
    %539 = memref.load %arg6[%c40] : memref<98xf32, #tpu.memory_space<smem>>
    %c89 = arith.constant 89 : index
    %540 = memref.load %arg6[%c89] : memref<98xf32, #tpu.memory_space<smem>>
    %541 = vector.extract_strided_slice %538 {offsets = [0, 0], sizes = [1, 256], strides = [1, 1]} : vector<2x256xf32> to vector<1x256xf32>
    %542 = vector.broadcast %539 : f32 to vector<1x256xf32>
    %543 = arith.mulf %542, %541 : vector<1x256xf32>
    %544 = vector.extract_strided_slice %538 {offsets = [1, 0], sizes = [1, 256], strides = [1, 1]} : vector<2x256xf32> to vector<1x256xf32>
    %545 = vector.broadcast %540 : f32 to vector<1x256xf32>
    %546 = arith.mulf %545, %544 : vector<1x256xf32>
    %547 = arith.addf %543, %546 : vector<1x256xf32>
    %548 = arith.mulf %52, %547 : vector<1x256xf32>
    %549 = arith.addf %501, %548 : vector<1x256xf32>
    %c0_127 = arith.constant 0 : index
    %c86_128 = arith.constant 86 : index
    %550 = vector.load %arg9[%c0_127, %c86_128] : memref<2x358xf32, #tpu.memory_space<vmem>>, vector<2x256xf32>
    %c41 = arith.constant 41 : index
    %551 = memref.load %arg6[%c41] : memref<98xf32, #tpu.memory_space<smem>>
    %c90 = arith.constant 90 : index
    %552 = memref.load %arg6[%c90] : memref<98xf32, #tpu.memory_space<smem>>
    %553 = vector.extract_strided_slice %550 {offsets = [0, 0], sizes = [1, 256], strides = [1, 1]} : vector<2x256xf32> to vector<1x256xf32>
    %554 = vector.broadcast %551 : f32 to vector<1x256xf32>
    %555 = arith.mulf %554, %553 : vector<1x256xf32>
    %556 = vector.extract_strided_slice %550 {offsets = [1, 0], sizes = [1, 256], strides = [1, 1]} : vector<2x256xf32> to vector<1x256xf32>
    %557 = vector.broadcast %552 : f32 to vector<1x256xf32>
    %558 = arith.mulf %557, %556 : vector<1x256xf32>
    %559 = arith.addf %555, %558 : vector<1x256xf32>
    %560 = arith.mulf %53, %559 : vector<1x256xf32>
    %561 = arith.addf %513, %560 : vector<1x256xf32>
    %c0_129 = arith.constant 0 : index
    %c96 = arith.constant 96 : index
    %562 = vector.load %arg9[%c0_129, %c96] : memref<2x358xf32, #tpu.memory_space<vmem>>, vector<2x256xf32>
    %c42 = arith.constant 42 : index
    %563 = memref.load %arg6[%c42] : memref<98xf32, #tpu.memory_space<smem>>
    %c91 = arith.constant 91 : index
    %564 = memref.load %arg6[%c91] : memref<98xf32, #tpu.memory_space<smem>>
    %565 = vector.extract_strided_slice %562 {offsets = [0, 0], sizes = [1, 256], strides = [1, 1]} : vector<2x256xf32> to vector<1x256xf32>
    %566 = vector.broadcast %563 : f32 to vector<1x256xf32>
    %567 = arith.mulf %566, %565 : vector<1x256xf32>
    %568 = vector.extract_strided_slice %562 {offsets = [1, 0], sizes = [1, 256], strides = [1, 1]} : vector<2x256xf32> to vector<1x256xf32>
    %569 = vector.broadcast %564 : f32 to vector<1x256xf32>
    %570 = arith.mulf %569, %568 : vector<1x256xf32>
    %571 = arith.addf %567, %570 : vector<1x256xf32>
    %572 = arith.mulf %47, %571 : vector<1x256xf32>
    %573 = arith.addf %525, %572 : vector<1x256xf32>
    %c0_130 = arith.constant 0 : index
    %c97 = arith.constant 97 : index
    %574 = vector.load %arg9[%c0_130, %c97] : memref<2x358xf32, #tpu.memory_space<vmem>>, vector<2x256xf32>
    %c43 = arith.constant 43 : index
    %575 = memref.load %arg6[%c43] : memref<98xf32, #tpu.memory_space<smem>>
    %c92 = arith.constant 92 : index
    %576 = memref.load %arg6[%c92] : memref<98xf32, #tpu.memory_space<smem>>
    %577 = vector.extract_strided_slice %574 {offsets = [0, 0], sizes = [1, 256], strides = [1, 1]} : vector<2x256xf32> to vector<1x256xf32>
    %578 = vector.broadcast %575 : f32 to vector<1x256xf32>
    %579 = arith.mulf %578, %577 : vector<1x256xf32>
    %580 = vector.extract_strided_slice %574 {offsets = [1, 0], sizes = [1, 256], strides = [1, 1]} : vector<2x256xf32> to vector<1x256xf32>
    %581 = vector.broadcast %576 : f32 to vector<1x256xf32>
    %582 = arith.mulf %581, %580 : vector<1x256xf32>
    %583 = arith.addf %579, %582 : vector<1x256xf32>
    %584 = arith.mulf %48, %583 : vector<1x256xf32>
    %585 = arith.addf %537, %584 : vector<1x256xf32>
    %c0_131 = arith.constant 0 : index
    %c98 = arith.constant 98 : index
    %586 = vector.load %arg9[%c0_131, %c98] : memref<2x358xf32, #tpu.memory_space<vmem>>, vector<2x256xf32>
    %c44 = arith.constant 44 : index
    %587 = memref.load %arg6[%c44] : memref<98xf32, #tpu.memory_space<smem>>
    %c93 = arith.constant 93 : index
    %588 = memref.load %arg6[%c93] : memref<98xf32, #tpu.memory_space<smem>>
    %589 = vector.extract_strided_slice %586 {offsets = [0, 0], sizes = [1, 256], strides = [1, 1]} : vector<2x256xf32> to vector<1x256xf32>
    %590 = vector.broadcast %587 : f32 to vector<1x256xf32>
    %591 = arith.mulf %590, %589 : vector<1x256xf32>
    %592 = vector.extract_strided_slice %586 {offsets = [1, 0], sizes = [1, 256], strides = [1, 1]} : vector<2x256xf32> to vector<1x256xf32>
    %593 = vector.broadcast %588 : f32 to vector<1x256xf32>
    %594 = arith.mulf %593, %592 : vector<1x256xf32>
    %595 = arith.addf %591, %594 : vector<1x256xf32>
    %596 = arith.mulf %49, %595 : vector<1x256xf32>
    %597 = arith.addf %549, %596 : vector<1x256xf32>
    %c0_132 = arith.constant 0 : index
    %c99 = arith.constant 99 : index
    %598 = vector.load %arg9[%c0_132, %c99] : memref<2x358xf32, #tpu.memory_space<vmem>>, vector<2x256xf32>
    %c45 = arith.constant 45 : index
    %599 = memref.load %arg6[%c45] : memref<98xf32, #tpu.memory_space<smem>>
    %c94 = arith.constant 94 : index
    %600 = memref.load %arg6[%c94] : memref<98xf32, #tpu.memory_space<smem>>
    %601 = vector.extract_strided_slice %598 {offsets = [0, 0], sizes = [1, 256], strides = [1, 1]} : vector<2x256xf32> to vector<1x256xf32>
    %602 = vector.broadcast %599 : f32 to vector<1x256xf32>
    %603 = arith.mulf %602, %601 : vector<1x256xf32>
    %604 = vector.extract_strided_slice %598 {offsets = [1, 0], sizes = [1, 256], strides = [1, 1]} : vector<2x256xf32> to vector<1x256xf32>
    %605 = vector.broadcast %600 : f32 to vector<1x256xf32>
    %606 = arith.mulf %605, %604 : vector<1x256xf32>
    %607 = arith.addf %603, %606 : vector<1x256xf32>
    %608 = arith.mulf %50, %607 : vector<1x256xf32>
    %609 = arith.addf %561, %608 : vector<1x256xf32>
    %c0_133 = arith.constant 0 : index
    %c100 = arith.constant 100 : index
    %610 = vector.load %arg9[%c0_133, %c100] : memref<2x358xf32, #tpu.memory_space<vmem>>, vector<2x256xf32>
    %c46 = arith.constant 46 : index
    %611 = memref.load %arg6[%c46] : memref<98xf32, #tpu.memory_space<smem>>
    %c95 = arith.constant 95 : index
    %612 = memref.load %arg6[%c95] : memref<98xf32, #tpu.memory_space<smem>>
    %613 = vector.extract_strided_slice %610 {offsets = [0, 0], sizes = [1, 256], strides = [1, 1]} : vector<2x256xf32> to vector<1x256xf32>
    %614 = vector.broadcast %611 : f32 to vector<1x256xf32>
    %615 = arith.mulf %614, %613 : vector<1x256xf32>
    %616 = vector.extract_strided_slice %610 {offsets = [1, 0], sizes = [1, 256], strides = [1, 1]} : vector<2x256xf32> to vector<1x256xf32>
    %617 = vector.broadcast %612 : f32 to vector<1x256xf32>
    %618 = arith.mulf %617, %616 : vector<1x256xf32>
    %619 = arith.addf %615, %618 : vector<1x256xf32>
    %620 = arith.mulf %51, %619 : vector<1x256xf32>
    %621 = arith.addf %573, %620 : vector<1x256xf32>
    %c0_134 = arith.constant 0 : index
    %c101 = arith.constant 101 : index
    %622 = vector.load %arg9[%c0_134, %c101] : memref<2x358xf32, #tpu.memory_space<vmem>>, vector<2x256xf32>
    %c47 = arith.constant 47 : index
    %623 = memref.load %arg6[%c47] : memref<98xf32, #tpu.memory_space<smem>>
    %c96_135 = arith.constant 96 : index
    %624 = memref.load %arg6[%c96_135] : memref<98xf32, #tpu.memory_space<smem>>
    %625 = vector.extract_strided_slice %622 {offsets = [0, 0], sizes = [1, 256], strides = [1, 1]} : vector<2x256xf32> to vector<1x256xf32>
    %626 = vector.broadcast %623 : f32 to vector<1x256xf32>
    %627 = arith.mulf %626, %625 : vector<1x256xf32>
    %628 = vector.extract_strided_slice %622 {offsets = [1, 0], sizes = [1, 256], strides = [1, 1]} : vector<2x256xf32> to vector<1x256xf32>
    %629 = vector.broadcast %624 : f32 to vector<1x256xf32>
    %630 = arith.mulf %629, %628 : vector<1x256xf32>
    %631 = arith.addf %627, %630 : vector<1x256xf32>
    %632 = arith.mulf %52, %631 : vector<1x256xf32>
    %633 = arith.addf %585, %632 : vector<1x256xf32>
    %c0_136 = arith.constant 0 : index
    %c102 = arith.constant 102 : index
    %634 = vector.load %arg9[%c0_136, %c102] : memref<2x358xf32, #tpu.memory_space<vmem>>, vector<2x256xf32>
    %c48_137 = arith.constant 48 : index
    %635 = memref.load %arg6[%c48_137] : memref<98xf32, #tpu.memory_space<smem>>
    %c97_138 = arith.constant 97 : index
    %636 = memref.load %arg6[%c97_138] : memref<98xf32, #tpu.memory_space<smem>>
    %637 = vector.extract_strided_slice %634 {offsets = [0, 0], sizes = [1, 256], strides = [1, 1]} : vector<2x256xf32> to vector<1x256xf32>
    %638 = vector.broadcast %635 : f32 to vector<1x256xf32>
    %639 = arith.mulf %638, %637 : vector<1x256xf32>
    %640 = vector.extract_strided_slice %634 {offsets = [1, 0], sizes = [1, 256], strides = [1, 1]} : vector<2x256xf32> to vector<1x256xf32>
    %641 = vector.broadcast %636 : f32 to vector<1x256xf32>
    %642 = arith.mulf %641, %640 : vector<1x256xf32>
    %643 = arith.addf %639, %642 : vector<1x256xf32>
    %644 = arith.mulf %53, %643 : vector<1x256xf32>
    %645 = arith.addf %597, %644 : vector<1x256xf32>
    %646 = arith.addf %645, %609 : vector<1x256xf32>
    %647 = arith.addf %621, %633 : vector<1x256xf32>
    %648 = arith.addf %646, %647 : vector<1x256xf32>
    %649 = arith.negf %648 : vector<1x256xf32>
    %650 = math.exp %649 : vector<1x256xf32>
    %cst_139 = arith.constant 1.000000e+00 : f32
    %651 = vector.broadcast %cst_139 : f32 to vector<1x256xf32>
    %652 = arith.addf %651, %650 : vector<1x256xf32>
    %653 = arith.divf %651, %652 : vector<1x256xf32>
    %654 = vector.broadcast %653 : vector<1x256xf32> to vector<32x256xf32>
    %655 = arith.mulf %36, %654 : vector<32x256xf32>
    %c0_140 = arith.constant 0 : index
    %c0_141 = arith.constant 0 : index
    %c0_142 = arith.constant 0 : index
    %656 = vector.load %arg8[%c0_140, %c0_141, %c0_142] : memref<1x32x256xf32, #tpu.memory_space<vmem>>, vector<1x32x256xf32>
    %657 = vector.shape_cast %656 : vector<1x32x256xf32> to vector<32x256xf32>
    %658 = vector.shape_cast %655 : vector<32x256xf32> to vector<1x32x256xf32>
    tpu.vector_store %arg8[%c0_140, %c0_141, %c0_142], %658 {strides = array<i32>} : memref<1x32x256xf32, #tpu.memory_space<vmem>>, vector<1x32x256xf32>,
    return
  }
  func.func @transform_0(%arg0: i32) -> (i32, i32, i32) {
    %c0_i32 = arith.constant 0 : i32
    %c0_i32_0 = arith.constant 0 : i32
    %c0_i32_1 = arith.constant 0 : i32
    return %arg0, %c0_i32, %c0_i32_0 : i32, i32, i32
  }
  func.func @transform_1(%arg0: i32) -> (i32, i32) {
    %c0_i32 = arith.constant 0 : i32
    %c0_i32_0 = arith.constant 0 : i32
    %c0_i32_1 = arith.constant 0 : i32
    return %c0_i32, %c0_i32_0 : i32, i32
  }
  func.func @transform_2(%arg0: i32) -> (i32, i32) {
    %c0_i32 = arith.constant 0 : i32
    %c0_i32_0 = arith.constant 0 : i32
    %c0_i32_1 = arith.constant 0 : i32
    return %c0_i32, %c0_i32_0 : i32, i32
  }
  func.func @transform_3(%arg0: i32) -> (i32, i32) {
    %c0_i32 = arith.constant 0 : i32
    %c0_i32_0 = arith.constant 0 : i32
    %c0_i32_1 = arith.constant 0 : i32
    return %c0_i32, %c0_i32_0 : i32, i32
  }
  func.func @transform_4(%arg0: i32) -> (i32, i32) {
    %c0_i32 = arith.constant 0 : i32
    %c0_i32_0 = arith.constant 0 : i32
    %c0_i32_1 = arith.constant 0 : i32
    return %c0_i32, %c0_i32_0 : i32, i32
  }
  func.func @transform_5(%arg0: i32) -> i32 {
    %c0_i32 = arith.constant 0 : i32
    %c0_i32_0 = arith.constant 0 : i32
    return %c0_i32 : i32
  }
  func.func @transform_6(%arg0: i32) -> (i32, i32) {
    %c0_i32 = arith.constant 0 : i32
    %c0_i32_0 = arith.constant 0 : i32
    %c0_i32_1 = arith.constant 0 : i32
    return %c0_i32, %c0_i32_0 : i32, i32
  }
  func.func @transform_7(%arg0: i32) -> (i32, i32, i32) {
    %c0_i32 = arith.constant 0 : i32
    %c0_i32_0 = arith.constant 0 : i32
    %c0_i32_1 = arith.constant 0 : i32
    return %arg0, %c0_i32, %c0_i32_0 : i32, i32, i32
  }
}

</mosaic_0001>

<bundles_post_ra>
// kernel: cbam_forward.1
= control target key start
LH: loop header
LB: loop body
LE: loop exit
PB: predicated region body
PF: predicated region fallthrough
CT: control target
= control target key end

     0   :  { %s3395_s0 = inlined_call_operand.vmem [shape: f32[2,32,256], index: 0, kind: input, shape index: {}]   ;;  %s3396_s1 = inlined_call_operand.vmem [shape: f32[2,32], index: 1, kind: input, shape index: {}]   ;;  %s3397_s2 = inlined_call_operand.vmem [shape: f32[2,1], index: 2, kind: input, shape index: {}]   ;;  %s3398_s3 = inlined_call_operand.vmem [shape: f32[32,2], index: 3, kind: input, shape index: {}]   ;;  %s3399_s4 = inlined_call_operand.vmem [shape: f32[32,1], index: 4, kind: input, shape index: {}]   ;;  %s3400_s5 = inlined_call_operand.vmem [shape: f32[98], index: 5, kind: input, shape index: {}]   ;;  %s3401_s6 = inlined_call_operand.vmem [shape: f32[7,256], index: 6, kind: input, shape index: {}]   ;;  %s3402_s7 = inlined_call_operand.vmem [shape: f32[2,32,256], index: 7, kind: output, shape index: {}]  }
   0x1   :  { %3404 = sst [smem:[#allocation6_spill]] %s3395_s0 }
   0x2   :  { %3405 = sst [smem:[#allocation7_spill]] %s3396_s1 }
   0x3   :  { %3406 = sst [smem:[#allocation8_spill]] %s3397_s2 }
   0x4   :  { %12 = vsyncpa [#allocation4], 0  ;;  %s2593_s24 = smov 0  }
   0x5 LB: > { %s2171_s25 = sadd.s32 4294967295, %s2497_s24   ;;  %p2173_p0 = scmp.ge.s32.totalorder %s2497_s24, 1  ;;  %s2497_s24 = sphi %s2593_s24, %s18_s24  }
   0x6   : > { %p201_p1 = scmp.lt.s32.totalorder %s2497_s24, 3  ;;  %s226_s28 = sshll.u32 %s3400_s5, 4  ;;  %s227_s28 = int_to_ptr.vmem [resolvable:$true] %s226_s28 }
   0x7   : > { %p2386_p3 = scmp.eq.s32.totalorder %s2171_s25, 0  ;;  %s2472_s30 = scalar_lea.vmem %s227_s28, 16 }
   0x8   : > { %p2604_p2 = pnand %p2173_p0, %p201_p1  ;;  %p2473_p6 = scmp.ne.s32.totalorder %s227_s28, %s2472_s30 }
   0x9   : > { %p2480_p10 = scmp.lt.s32.totalorder %s227_s28, %s227_s28  ;;  %p2481_p11 = scmp.lt.s32.totalorder %s2472_s30, %s2472_s30 }
   0xa   : > { %p2382_p4 = pneg %p2604_p2 }
   0xb   : > { %p2482_p12 = por %p2481_p11, %p2480_p10 }
   0xc   : > { %p2383_p5 = pnand %p2386_p3, %p2382_p4 }
   0xe   : > { %p2474_p7 = pneg %p2383_p5 }
  0x10   : > { %p2475_p8 = pnand %p2474_p7, %p2473_p6 }
  0x12   : > { %p2476_p9 = pneg %p2475_p8 }
  0x14   : > { %p2483_p13 = pnand %p2482_p12, %p2476_p9 }
  0x16   : > { %2486 = shalt.err (!%p2483_p13)
}
  0x17   : > { %s2499_s8 = smov [#allocation3]   ;;  %250 = sbr.rel (%p2604_p2) target bundleno = 1190 (0x4a6), region = 48 }
  0x18   : > { %2385 = dma.vmem_to_smem (!%p2383_p5), %s227_s28, 16, %s2499_s8, [#allocation4]  }
  0x1c   : > { %2492 = dma.done.wait (%p2386_p3), [#allocation4], 16  }
  0x1d   : > { %2494 = vsyncadd (%p2386_p3), [#allocation4], 4294967280 }
  0x1e   : > { %256 = sfence }
  0x1f   : > { %p283_p0 = scmp.lt.s32.totalorder %s2171_s25, 1  ;;  %s3408_s0 = sld [smem:[#allocation6_spill]]  ;;  %v2500_v16 = vmov 0.0   ;;  %vm2501_vm0 = vmmov 0   ;;  %v2502_v17 = vmov 0   ;;  %v330_v19 = vlaneseq  ;;  %v419_v38 = vld [vmem:[%s3398_s3] sm:$0xff] }
  0x20   : > { %2359 = vmatprep.subr.mxu0 %v2500_v16  ;;  %2367 = vmatprep.mubr.msk.f32.mxu0 %vm2501_vm0, %v2500_v16  ;;  %s3409_s2 = sld [smem:[#allocation8_spill]]  ;;  %vm344_vm2 = vcmask 261120   ;;  %vm460_vm3 = vcmask 1041408   ;;  %vm593_vm4 = vcmask 1043458   ;;  %vm595_vm5 = vcmask 832516   ;;  %v423_v39 = vld [vmem:[%s3399_s4] sm:$0xff] }
  0x21   : > { %s3417_s25 = smov (!%p283_p0, %s2171_s25), 1  ;;  %2450 = vset.pattern.permute.xlu0 %v2502_v17  ;;  %2451 = vset.pattern.permute.xlu1 %v2502_v17  ;;  %v331_v20 = vand.u32 127, %v330_v19  ;;  %s3410_s1 = sld [smem:[#allocation7_spill]]  ;;  %vm447_vm6 = vcmask 15360   ;;  %vm594_vm7 = vmor %vm593_vm4, %vm460_vm3  ;;  %v424_v40 = vld [vmem:[%s3399_s4 + $0x8] sm:$0xff]  ;;  %v425_v41 = vld [vmem:[%s3399_s4 + $0x10] sm:$0xff] }
  0x22   : > { %s3403_s9 = sshll.u32 %s3417_s25, 6  ;;  %2372 = vmatprep.mubr.msk.f32.mxu1 %vm447_vm6, %v419_v38  ;;  %vm596_vm8 = vmor %vm595_vm5, %vm594_vm7  ;;  %v426_v42 = vld [vmem:[%s3399_s4 + $0x18] sm:$0xff]  ;;  %v420_v48 = vld [vmem:[%s3398_s3 + $0x8] sm:$0xff]  ;;  %s2504_s13 = smov 51   ;;  %vm2775_vm9 = vcmp.ge.s32.totalorder %v330_v19, 51  ;;  %vm2780_vm10 = vcmp.lt.s32.totalorder %v330_v19, 307 }
  0x23   : > { %vm332_vm1 = vcmp.eq.s32.totalorder %v331_v20, 0  ;;  %597 = vst.msk [vmem:[#allocation2] sm:$0x3f] %vm596_vm8, %v2500_v16  ;;  %v421_v49 = vld [vmem:[%s3398_s3 + $0x10] sm:$0xff]  ;;  %v422_v50 = vld [vmem:[%s3398_s3 + $0x18] sm:$0xff]  ;;  %s2752_s14 = sld [smem:[#allocation3 + $0x4]]  ;;  %vm642_vm12 = vmand %vm2775_vm9, %vm2780_vm10 }
  0x24   : > { %s2754_s15 = sld [smem:[#allocation3 + $0x35]]  ;;  %vm636_vm11 = vcmask 416768   ;;  %vm860_vm13 = vcmask 1006592   ;;  %vm748_vm14 = vcmask 1039360   ;;  %vm776_vm15 = vcmask 1031168  }
  0x25   : > { %s287_s12 = scalar_lea.vmem %s3408_s0, %s3403_s9  ;;  %s2756_s16 = sld [smem:[#allocation3 + $0x2]]  ;;  %vm888_vm0 = vcmask 998400   ;;  %vm804_vm4 = vcmask 1022976   ;;  %vm972_vm5 = vcmask 900096   ;;  %vm944_vm7 = vcmask 908288  }
  0x26   : > { %v2623_v0 = vld [vmem:[%s287_s12 + $0x30] sm:$0xff]  ;;  %v2625_v1 = vld [vmem:[%s287_s12 + $0x38] sm:$0xff]  ;;  %v2627_v2 = vld [vmem:[%s287_s12 + $0x20] sm:$0xff]  ;;  %s2758_s17 = sld [smem:[#allocation3 + $0x33]]  ;;  %vm1084_vm8 = vcmask 867328   ;;  %vm1000_vm9 = vcmask 891904  }
  0x27   : > { %v327_v3 = vmax.f32 %v2623_v0, %v2625_v1  ;;  %v310_v4 = vadd.f32 %v2625_v1, %v2623_v0  ;;  %v2633_v5 = vld [vmem:[%s287_s12 + $0x28] sm:$0xff]  ;;  %v2635_v6 = vld [vmem:[%s287_s12 + $0x10] sm:$0xff]  ;;  %v2637_v7 = vld [vmem:[%s287_s12 + $0x18] sm:$0xff]  ;;  %s2760_s18 = sld [smem:[#allocation3 + $0x5]]  ;;  %vm1140_vm10 = vcmask 777216  }
  0x28   : > { %v307_v8 = vadd.f32 %v2633_v5, %v2627_v2  ;;  %v304_v9 = vadd.f32 %v2637_v7, %v2635_v6  ;;  %v2643_v10 = vld [vmem:[%s287_s12] sm:$0xff]  ;;  %v2645_v11 = vld [vmem:[%s287_s12 + $0x8] sm:$0xff]  ;;  %v324_v12 = vmax.f32 %v2627_v2, %v2633_v5  ;;  %v321_v14 = vmax.f32 %v2635_v6, %v2637_v7  ;;  %s2762_s19 = sld [smem:[#allocation3 + $0x36]] }
  0x29   : > { %328 = vmax.xlane.f32.xlu1 %v327_v3  ;;  %311 = vadd.xlane.f32.xlu0 %v310_v4  ;;  %v301_v13 = vadd.f32 %v2645_v11, %v2643_v10  ;;  %v318_v15 = vmax.f32 %v2643_v10, %v2645_v11  ;;  %v338_v18 = vld [vmem:[%s3409_s2] sm:$0x3]  ;;  %s2764_s20 = sld [smem:[#allocation3 + $0x1]] }
  0x2a   : > { %v337_v36 = vld [vmem:[%s3410_s1] sm:$0x3]  ;;  %s2766_s21 = sld [smem:[#allocation3 + $0x32]] }
  0x2b   : > { %s2768_s22 = sld [smem:[#allocation3 + $0x7]] }
  0x2c   : > { %s2770_s23 = sld [smem:[#allocation3 + $0x38]] }
  0x2d   : > { %308 = vadd.xlane.f32.xlu0 %v307_v8  ;;  %305 = vadd.xlane.f32.xlu1 %v304_v9  ;;  %s2772_s26 = sld [smem:[#allocation3 + $0x3]] }
  0x2e   : > { %s2784_s27 = sld [smem:[#allocation3 + $0x34]] }
  0x2f   : > { %s2786_s28 = sld [smem:[#allocation3 + $0x9]] }
  0x30   : > { %s2788_s29 = sld [smem:[#allocation3 + $0x3a]] }
  0x31   : > { %325 = vmax.xlane.f32.xlu0 %v324_v12  ;;  %302 = vadd.xlane.f32.xlu1 %v301_v13  ;;  %s2794_s30 = sld [smem:[#allocation3 + $0x6]] }
  0x32   : > { %s2796_s8 = sld [smem:[#allocation3 + $0x37]] }
  0x33   : > { %s2798_s10 = sld [smem:[#allocation3 + $0xb]] }
  0x34   : > { %s2800_s11 = sld [smem:[#allocation3 + $0x3c]] }
  0x35   : > { %322 = vmax.xlane.f32.xlu0 %v321_v14  ;;  %319 = vmax.xlane.f32.xlu1 %v318_v15  ;;  %s2802_s12 = sld [smem:[#allocation3 + $0x8]] }
  0x36   : > { %s2806_s9 = sld [smem:[#allocation3 + $0xd]] }
  0x37   : > { %s2808_s0 = sld [smem:[#allocation3 + $0x3e]] }
  0x38   : > { %s2812_s1 = sld [smem:[#allocation3 + $0xa]] }
  0x39   : > { %s2818_s2 = sld [smem:[#allocation3 + $0x3b]] }
  0x46   : > { %429 = vperm.xlu1 %2451, %v423_v39  }
  0x4a   : > { %434 = vperm.xlu1 %2451, %v424_v40  }
  0x4b   : > { %341 = vperm.xlu0 %2450, %v338_v18  }
  0x4e   : > { %439 = vperm.xlu1 %2451, %v425_v41  }
  0x52   : > { %444 = vperm.xlu1 %2451, %v426_v42  }
  0xb2   : > { %v329_v21 = vpop.xlane.xlu1 %328  ;;  %v312_v22 = vpop.xlane.xlu0 %311 }
  0xb3   : > { %v317_v23 = vmul.f32 0.00390625, %v312_v22 }
  0xb5   : > { %v336_v24 = vsel %vm332_vm1, %v317_v23, %v329_v21 }
  0xb6   : > { %2360 = vmatpush3.msra.mxu0 %v336_v24  ;;  %v309_v25 = vpop.xlane.xlu0 %308  ;;  %v306_v26 = vpop.xlane.xlu1 %305 }
  0xb7   : > { %2361 = vmatprep.subr.mxu0 %v2500_v16  ;;  %v316_v27 = vmul.f32 0.00390625, %v309_v25  ;;  %v315_v31 = vmul.f32 0.00390625, %v306_v26 }
  0xba   : > { %v326_v28 = vpop.xlane.xlu0 %325  ;;  %v303_v29 = vpop.xlane.xlu1 %302 }
  0xbb   : > { %v335_v30 = vsel %vm332_vm1, %v316_v27, %v326_v28  ;;  %v314_v32 = vmul.f32 0.00390625, %v303_v29 }
  0xbc   : > { %2362 = vmatpush3.msra.mxu0 %v335_v30 }
  0xbd   : > { %2363 = vmatprep.subr.mxu0 %v2500_v16 }
  0xbe   : > { %v323_v33 = vpop.xlane.xlu0 %322  ;;  %v320_v34 = vpop.xlane.xlu1 %319 }
  0xbf   : > { %v334_v35 = vsel %vm332_vm1, %v315_v31, %v323_v33  ;;  %v333_v37 = vsel %vm332_vm1, %v314_v32, %v320_v34  ;;  %vm832_vm1 = vcmask 1014784  }
  0xc0   : > { %2364 = vmatpush3.msra.mxu0 %v334_v35 }
  0xc1   : > { %2365 = vmatprep.subr.mxu0 %v2500_v16 }
  0xc2   : > { %2366 = vmatpush3.msra.mxu0 %v333_v37  ;;  %v430_v51 = vpop.permute.xlu1 %429 }
  0xc3   : > { %2368 = vmatmul.mubr.msk.f32.vlgmr.msra.gmra.mxu0 %vm344_vm2, %v337_v36 }
  0xc6   : > { %v342_v43 = vpop.permute.xlu0 %341  ;;  %v435_v52 = vpop.permute.xlu1 %434 }
  0xca   : > { %v440_v55 = vpop.permute.xlu1 %439 }
  0xce   : > { %v445_v63 = vpop.permute.xlu1 %444 }
 0x183   : > { %v414_v44 = vpop.f32.mrf.mxu0 }
 0x184   : > { %v415_v45 = vadd.f32 %v414_v44, %v342_v43 }
 0x185   : > { %v2369_v46 = vpop.f32.mrf.mxu0 }
 0x186   : > { %v418_v47 = vmax.f32 %v415_v45, 0.0 }
 0x188   : > { %2370 = vmatprep.subr.msk.mxu1 %vm460_vm3, %v418_v47 }
 0x189   : > { %2371 = vmatpush3.msk.msra.mxu1 %vm460_vm3, %v418_v47  ;;  %vm916_vm3 = vcmask 916480  }
 0x18a   : > { %2373 = vmatmul.mubr.msk.f32.vlgmr.msra.gmra.mxu1 %vm447_vm6, %v420_v48 }
 0x18b   : > { %2375 = vmatprep.mubr.msk.f32.mxu1 %vm447_vm6, %v421_v49 }
 0x18e   : > { %2376 = vmatmul.mubr.msk.f32.gmra.mxu1 %vm447_vm6, %v422_v50  ;;  %v2503_v50 = vmov 1966171168  }
 0x24a   : > { %v2374_v53 = vpop.f32.mrf.mxu1 }
 0x24b   : > { %v536_v54 = vadd.f32 %v2374_v53, %v435_v52 }
 0x24c   : > { %v530_v56 = vpop.f32.mrf.mxu1 }
 0x24d   : > { %v531_v57 = vadd.f32 %v530_v56, %v430_v51  ;;  %v552_v58 = vsel %vm447_vm6, %v536_v54, 0.0  ;;  %v620_v51 = vunpack.c.l.s4 %v2503_v50 }
 0x24e   : > { %v2377_v59 = vpop.f32.mrf.mxu1  ;;  %553 = vadd.xlane.f32.xlu0 %v552_v58 }
 0x24f   : > { %v549_v60 = vsel %vm447_vm6, %v531_v57, 0.0  ;;  %v546_v3 = vadd.f32 %v2377_v59, %v445_v63 }
 0x250   : > { %v540_v61 = vpop.f32.mrf.mxu1  ;;  %550 = vadd.xlane.f32.xlu1 %v549_v60  ;;  %v621_v60 = vunpack.c.0.s8 %v620_v51  ;;  %v784_v51 = vstv %s2772_s26  ;;  %s2853_s26 = sld [smem:[#allocation3 + $0x13]] }
 0x251   : > { %v541_v62 = vadd.f32 %v540_v61, %v440_v55  ;;  %v558_v8 = vsel %vm447_vm6, %v546_v3, 0.0  ;;  %v2743_v61 = vshrl.u32 %v330_v19, 7 }
 0x253   : > { %v555_v4 = vsel %vm447_vm6, %v541_v62, 0.0  ;;  %vm1028_vm6 = vcmask 883712  }
 0x254   : > { %556 = vadd.xlane.f32.xlu1 %v555_v4 }
 0x258   : > { %559 = vadd.xlane.f32.xlu1 %v558_v8 }
 0x2d7   : > { %v554_v9 = vpop.xlane.xlu0 %553 }
 0x2d8   : > { %v2189_v12 = vmul.f32 -1.442695, %v554_v9 }
 0x2d9   : > { %v551_v13 = vpop.xlane.xlu1 %550 }
 0x2da   : > { %2452 = vpow2.f32 %v2189_v12  ;;  %v2188_v14 = vmul.f32 -1.442695, %v551_v13 }
 0x2dc   : > { %2454 = vpow2.f32 %v2188_v14  ;;  %v2746_v14 = vsub.s32 %v621_v60, %v2743_v61 }
 0x2dd   : > { %v557_v15 = vpop.xlane.xlu1 %556 }
 0x2de   : > { %v2190_v16 = vmul.f32 -1.442695, %v557_v15 }
 0x2e0   : > { %2456 = vpow2.f32 %v2190_v16 }
 0x2e1   : > { %v560_v17 = vpop.xlane.xlu1 %559 }
 0x2e2   : > { %v2191_v18 = vmul.f32 -1.442695, %v560_v17 }
 0x2e4   : > { %2458 = vpow2.f32 %v2191_v18 }
 0x2e7   : > { %v2453_v20 = vpop.eup %2452 }
 0x2e8   : > { %v574_v22 = vadd.f32 1.0, %v2453_v20 }
 0x2e9   : > { %v2455_v21 = vpop.eup %2454 }
 0x2ea   : > { %v573_v23 = vadd.f32 1.0, %v2455_v21 }
 0x2ec   : > { %2460 = vrcp.f32 %v573_v23 }
 0x2ed   : > { %v2457_v24 = vpop.eup %2456  ;;  %2462 = vrcp.f32 %v574_v22 }
 0x2ee   : > { %v575_v25 = vadd.f32 1.0, %v2457_v24 }
 0x2f0   : > { %2464 = vrcp.f32 %v575_v25 }
 0x2f1   : > { %v2459_v26 = vpop.eup %2458 }
 0x2f2   : > { %v576_v27 = vadd.f32 1.0, %v2459_v26 }
 0x2f4   : > { %2466 = vrcp.f32 %v576_v27 }
 0x2f9   : > { %v2461_v28 = vpop.eup %2460 }
 0x2fa   : > { %v2463_v29 = vpop.eup %2462  ;;  %v2703_v30 = vmul.f32 %v2461_v28, %v2643_v10  ;;  %v2706_v31 = vmul.f32 %v2461_v28, %v2645_v11 }
 0x2fb   : > { %v2709_v33 = vmul.f32 %v2463_v29, %v2635_v6  ;;  %v2712_v34 = vmul.f32 %v2463_v29, %v2637_v7 }
 0x2fd   : > { %v2465_v32 = vpop.eup %2464  ;;  %v644_v10 = vadd.f32 %v2709_v33, %v2703_v30  ;;  %v653_v11 = vadd.f32 %v2712_v34, %v2706_v31 }
 0x2fe   : > { %v2715_v35 = vmul.f32 %v2465_v32, %v2627_v2  ;;  %v2718_v36 = vmul.f32 %v2465_v32, %v2633_v5 }
 0x300   : > { %v645_v7 = vadd.f32 %v644_v10, %v2715_v35  ;;  %v654_v2 = vadd.f32 %v653_v11, %v2718_v36  ;;  %v598_v5 = vmax.f32 %v2703_v30, %v2715_v35  ;;  %v607_v39 = vmax.f32 %v2706_v31, %v2718_v36 }
 0x301   : > { %v2467_v37 = vpop.eup %2466 }
 0x302   : > { %v2725_v38 = vmul.f32 %v2467_v37, %v2623_v0  ;;  %v2728_v6 = vmul.f32 %v2467_v37, %v2625_v1  ;;  %v814_v37 = vstv %s2754_s15  ;;  %s2829_s15 = sld [smem:[#allocation3 + $0x40]] }
 0x304   : > { %v646_v40 = vadd.f32 %v645_v7, %v2725_v38  ;;  %v655_v41 = vadd.f32 %v654_v2, %v2728_v6  ;;  %v599_v0 = vmax.f32 %v2709_v33, %v2725_v38  ;;  %v608_v1 = vmax.f32 %v2712_v34, %v2728_v6 }
 0x305   : > { %v758_v7 = vstv %s2758_s17  ;;  %v812_v2 = vstv %s2752_s14  ;;  %s2827_s14 = sld [smem:[#allocation3 + $0xf]] }
 0x306   : > { %v647_v42 = vrot.slane %v646_v40, 4  ;;  %v656_v43 = vrot.slane %v655_v41, 4  ;;  %v600_v44 = vmax.f32 %v598_v5, %v599_v0  ;;  %v609_v45 = vmax.f32 %v607_v39, %v608_v1  ;;  %s2834_s17 = sld [smem:[#allocation3 + $0x3d]] }
 0x307   : > { %v756_v5 = vstv %s2756_s16  ;;  %v842_v39 = vstv %s2762_s19  ;;  %s2831_s16 = sld [smem:[#allocation3 + $0xc]] }
 0x308   : > { %v648_v46 = vadd.f32 %v647_v42, %v646_v40  ;;  %v657_v47 = vadd.f32 %v656_v43, %v655_v41  ;;  %v601_v48 = vrot.slane %v600_v44, 4  ;;  %v610_v49 = vrot.slane %v609_v45, 4  ;;  %s2841_s19 = sld [smem:[#allocation3 + $0x42]] }
 0x309   : > { %v730_v40 = vstv %s2766_s21  ;;  %v840_v42 = vstv %s2760_s18  ;;  %v728_v43 = vstv %s2764_s20  ;;  %s2837_s18 = sld [smem:[#allocation3 + $0x11]]  ;;  %s2505_s21 = smov 124  }
 0x30a   : > { %v649_v52 = vrot.slane %v648_v46, 2  ;;  %v658_v53 = vrot.slane %v657_v47, 2  ;;  %v602_v54 = vmax.f32 %v600_v44, %v601_v48  ;;  %v611_v55 = vmax.f32 %v609_v45, %v610_v49  ;;  %s2846_s20 = sld [smem:[#allocation3 + $0xe]] }
 0x30b   : > { %v896_v44 = vstv %s2768_s22  ;;  %v898_v45 = vstv %s2770_s23  ;;  %s2506_s22 = smov 126   ;;  %s2850_s23 = sld [smem:[#allocation3 + $0x3f]] }
 0x30c   : > { %v650_v56 = vadd.f32 %v649_v52, %v648_v46  ;;  %v659_v57 = vadd.f32 %v658_v53, %v657_v47  ;;  %v603_v58 = vrot.slane %v602_v54, 2  ;;  %v612_v59 = vrot.slane %v611_v55, 2 }
 0x30d   : > { %v786_v52 = vstv %s2784_s27  ;;  %s2508_s27 = smov 127  }
 0x30e   : > { %v651_v62 = vrot.slane %v650_v56, 1  ;;  %v660_v63 = vrot.slane %v659_v57, 1  ;;  %v604_v3 = vmax.f32 %v602_v54, %v603_v58  ;;  %v613_v4 = vmax.f32 %v611_v55, %v612_v59 }
 0x310   : > { %v652_v8 = vadd.f32 %v651_v62, %v650_v56  ;;  %v661_v9 = vadd.f32 %v660_v63, %v659_v57  ;;  %v605_v12 = vrot.slane %v604_v3, 1  ;;  %v614_v13 = vrot.slane %v613_v4, 1 }
 0x311   : > { %v954_v56 = vstv %s2788_s29  ;;  %s2863_s29 = sld [smem:[#allocation3 + $0x10]] }
 0x312   : > { %v663_v15 = vmul.f32 0.03125, %v652_v8  ;;  %v664_v16 = vmul.f32 0.03125, %v661_v9  ;;  %v606_v17 = vmax.f32 %v604_v3, %v605_v12  ;;  %v615_v18 = vmax.f32 %v613_v4, %v614_v13 }
 0x314   : > { %v667_v20 = vcombine.low %v663_v15, %v664_v16  ;;  %v618_v21 = vcombine.low %v606_v17, %v615_v18  ;;  %v870_v15 = vstv %s2796_s8  ;;  %s2509_s8 = smov 112  }
 0x316   : > { %v674_v22 = vrot.slane %v667_v20, %v2746_v14  ;;  %v625_v23 = vrot.slane %v618_v21, %v2746_v14  ;;  %v1010_v21 = vstv %s2800_s11  ;;  %s2876_s11 = sld [smem:[#allocation3 + $0x12]] }
 0x318   : > { %v681_v24 = vrot.slane %v674_v22, %v2746_v14  ;;  %v632_v25 = vrot.slane %v625_v23, %v2746_v14 }
 0x31a   : > { %682 = vrot.lane.b32.xlu0 %v681_v24, %s2504_s13  ;;  %633 = vrot.lane.b32.xlu1 %v632_v25, %s2504_s13  ;;  %s2804_s13 = sld [smem:[#allocation3 + $0x39]] }
 0x38c   : > { %v683_v28 = vpop.permute.xlu0 %682  ;;  %v634_v29 = vpop.permute.xlu1 %633 }
 0x38d   : > { %v684_v19 = vrot.slane %v683_v28, 7  ;;  %v635_v32 = vrot.slane %v634_v29, 7 }
 0x38f   : > { %v685_v10 = vsel %vm636_vm11, %v684_v19, %v683_v28  ;;  %v637_v11 = vsel %vm636_vm11, %v635_v32, %v634_v29  ;;  %v952_v28 = vstv %s2786_s28  ;;  %v868_v29 = vstv %s2794_s30  ;;  %s2861_s28 = sld [smem:[#allocation3 + $0x41]] }
 0x390   : > { %688 = vst.msk [vmem:[#allocation2 + $0x1] ss:$2 sm:$0x7] %vm642_vm12, %v685_v10  ;;  %643 = vst.msk [vmem:[#allocation2] ss:$2 sm:$0x7] %vm642_vm12, %v637_v11  ;;  %v926_v32 = vstv %s2804_s13 }
 0x391   : > { %s2867_s30 = sld [smem:[#allocation3 + $0x15]]  ;;  %vm1056_vm11 = vcmask 875520   ;;  %vm1196_vm12 = vcmask 760832  }
 0x392   : > { %s2886_s13 = sld [smem:[#allocation3 + $0x48]] }
 0x397   : > { %v809_v41 = vld [vmem:[#allocation2] sm:$0x3f] }
 0x398   : > { %v753_v0 = vld [vmem:[#allocation2] sm:$0x3f]  ;;  %v815_v46 = vmul.f32 %v814_v37, %v809_v41  ;;  %v813_v53 = vmul.f32 %v812_v2, %v809_v41  ;;  %v1066_v37 = vstv %s2808_s0  ;;  %s2857_s0 = sld [smem:[#allocation3 + $0x44]] }
 0x399   : > { %v837_v1 = vld [vmem:[#allocation2] sm:$0x3f]  ;;  %v759_v47 = vmul.f32 %v758_v7, %v753_v0  ;;  %v757_v58 = vmul.f32 %v756_v5, %v753_v0  ;;  %v982_v7 = vstv %s2818_s2  ;;  %s2507_s2 = smov 123  }
 0x39a   : > { %v725_v48 = vld [vmem:[#allocation2] sm:$0x3f]  ;;  %v843_v54 = vmul.f32 %v842_v39, %v837_v1  ;;  %v2211_v57 = vrot.slane %v815_v46, 9  ;;  %v841_v63 = vmul.f32 %v840_v42, %v837_v1  ;;  %v1008_v46 = vstv %s2798_s10  ;;  %s2510_s10 = smov 125  }
 0x39b   : > { %v893_v49 = vld [vmem:[#allocation2] sm:$0x3f]  ;;  %v731_v55 = vmul.f32 %v730_v40, %v725_v48  ;;  %v2205_v59 = vrot.slane %v759_v47, 9  ;;  %v729_v13 = vmul.f32 %v728_v43, %v725_v48  ;;  %v924_v48 = vstv %s2802_s12  ;;  %s2882_s12 = sld [smem:[#allocation3 + $0x17]] }
 0x39c   : > { %v781_v50 = vld [vmem:[#allocation2] sm:$0x3f]  ;;  %v899_v60 = vmul.f32 %v898_v45, %v893_v49  ;;  %v2214_v3 = vrot.slane %v843_v54, 9  ;;  %v820_v9 = vadd.f32 %v2211_v57, %v813_v53  ;;  %v897_v27 = vmul.f32 %v896_v44, %v893_v49 }
 0x39d   : > { %v949_v62 = vld [vmem:[#allocation2] sm:$0x3f]  ;;  %v2202_v4 = vrot.slane %v731_v55, 9  ;;  %v787_v8 = vmul.f32 %v786_v52, %v781_v50  ;;  %v764_v12 = vadd.f32 %v2205_v59, %v757_v58  ;;  %v785_v10 = vmul.f32 %v784_v51, %v781_v50 }
 0x39e   : > { %v848_v16 = vadd.f32 %v2214_v3, %v841_v63  ;;  %v2220_v17 = vrot.slane %v899_v60, 9  ;;  %v955_v18 = vmul.f32 %v954_v56, %v949_v62  ;;  %v865_v20 = vld [vmem:[#allocation2] sm:$0x3f]  ;;  %v828_v22 = vrot.slane %v820_v9, %v2746_v14 }
 0x39f   : > { %v772_v23 = vrot.slane %v764_v12, %v2746_v14  ;;  %v736_v24 = vadd.f32 %v2202_v4, %v729_v13  ;;  %v2208_v25 = vrot.slane %v787_v8, 9  ;;  %v1005_v26 = vld [vmem:[#allocation2] sm:$0x3f]  ;;  %v871_v11 = vmul.f32 %v870_v15, %v865_v20 }
 0x3a0   : > { %v921_v19 = vld [vmem:[#allocation2] sm:$0x3f]  ;;  %829 = vrot.lane.b32.xlu1 %v828_v22, %s2505_s21  ;;  %v856_v2 = vrot.slane %v848_v16, %v2746_v14  ;;  %v904_v5 = vadd.f32 %v2220_v17, %v897_v27  ;;  %v2226_v39 = vrot.slane %v955_v18, 9  ;;  %v1011_v40 = vmul.f32 %v1010_v21, %v1005_v26  ;;  %s2513_s21 = smov 108  }
 0x3a1   : > { %773 = vrot.lane.b32.xlu0 %v772_v23, %s2506_s22  ;;  %v744_v41 = vrot.slane %v736_v24, %v2746_v14  ;;  %v792_v0 = vadd.f32 %v2208_v25, %v785_v10  ;;  %v2217_v1 = vrot.slane %v871_v11, 9  ;;  %v927_v42 = vmul.f32 %v926_v32, %v921_v19  ;;  %v1061_v43 = vld [vmem:[#allocation2] sm:$0x3f]  ;;  %s2514_s22 = smov 111  }
 0x3a2   : > { %v977_v44 = vld [vmem:[#allocation2] sm:$0x3f]  ;;  %v953_v45 = vmul.f32 %v952_v28, %v949_v62  ;;  %v869_v47 = vmul.f32 %v868_v29, %v865_v20  ;;  %v1064_v49 = vstv %s2806_s9  ;;  %v2232_v51 = vrot.slane %v1011_v40, 9  ;;  %s2872_s9 = sld [smem:[#allocation3 + $0x46]] }
 0x3a3   : > { %v1067_v52 = vmul.f32 %v1066_v37, %v1061_v43  ;;  %v983_v53 = vmul.f32 %v982_v7, %v977_v44  ;;  %v912_v54 = vrot.slane %v904_v5, %v2746_v14  ;;  %v800_v55 = vrot.slane %v792_v0, %v2746_v14  ;;  %v1117_v60 = vld [vmem:[#allocation2] sm:$0x3f] }
 0x3a4   : > { %745 = vrot.lane.b32.xlu1 %v744_v41, %s2508_s27  ;;  %v960_v50 = vadd.f32 %v2226_v39, %v953_v45  ;;  %v876_v56 = vadd.f32 %v2217_v1, %v869_v47  ;;  %v2223_v57 = vrot.slane %v927_v42, 9  ;;  %v1009_v58 = vmul.f32 %v1008_v46, %v1005_v26  ;;  %v1033_v63 = vld [vmem:[#allocation2] sm:$0x3f]  ;;  %s2516_s27 = smov 109  }
 0x3a5   : > { %857 = vrot.lane.b32.xlu0 %v856_v2, %s2507_s2  ;;  %v980_v59 = vstv %s2812_s1  ;;  %v1122_v62 = vstv %s2829_s15  ;;  %v1038_v3 = vstv %s2834_s17  ;;  %v925_v4 = vmul.f32 %v924_v48, %v921_v19  ;;  %s2879_s1 = sld [smem:[#allocation3 + $0x43]]  ;;  %v1173_v22 = vld [vmem:[#allocation2] sm:$0x3f]  ;;  %s2512_s15 = smov 122  }
 0x3a6   : > { %v1120_v8 = vstv %s2827_s14  ;;  %v1178_v9 = vstv %s2841_s19  ;;  %v968_v12 = vrot.slane %v960_v50, %v2746_v14  ;;  %v1016_v13 = vadd.f32 %v2232_v51, %v1009_v58  ;;  %v1089_v26 = vld [vmem:[#allocation2] sm:$0x3f]  ;;  %s2511_s14 = smov 110   ;;  %s2890_s17 = sld [smem:[#allocation3 + $0x14]] }
 0x3a7   : > { %v2238_v15 = vrot.slane %v1067_v52, 9  ;;  %v2229_v16 = vrot.slane %v983_v53, 9  ;;  %v884_v17 = vrot.slane %v876_v56, %v2746_v14  ;;  %v932_v18 = vadd.f32 %v2223_v57, %v925_v4  ;;  %v1229_v39 = vld [vmem:[#allocation2] sm:$0x3f]  ;;  %s2897_s19 = sld [smem:[#allocation3 + $0x19]]  ;;  %s2515_s2 = smov 106  }
 0x3a8   : > { %801 = vrot.lane.b32.xlu1 %v800_v55, %s2510_s10  ;;  %v1123_v20 = vmul.f32 %v1122_v62, %v1117_v60  ;;  %v1039_v21 = vmul.f32 %v1038_v3, %v1033_v63  ;;  %v1065_v23 = vmul.f32 %v1064_v49, %v1061_v43  ;;  %v981_v24 = vmul.f32 %v980_v59, %v977_v44  ;;  %v1145_v40 = vld [vmem:[#allocation2] sm:$0x3f]  ;;  %s2929_s10 = sld [smem:[#allocation3 + $0x4e]] }
 0x3a9   : > { %913 = vrot.lane.b32.xlu0 %v912_v54, %s2509_s8  ;;  %v1036_v25 = vstv %s2831_s16  ;;  %v1094_v27 = vstv %s2850_s23  ;;  %v1234_v28 = vstv %s2857_s0  ;;  %v1024_v19 = vrot.slane %v1016_v13, %v2746_v14  ;;  %s2893_s16 = sld [smem:[#allocation3 + $0x45]]  ;;  %v1285_v52 = vld [vmem:[#allocation2] sm:$0x3f]  ;;  %s2518_s8 = smov 107  }
 0x3aa   : > { %v1150_v29 = vstv %s2861_s28  ;;  %v1072_v32 = vadd.f32 %v2238_v15, %v1065_v23  ;;  %v988_v10 = vadd.f32 %v2229_v16, %v981_v24  ;;  %v1179_v11 = vmul.f32 %v1178_v9, %v1173_v22  ;;  %s2901_s23 = sld [smem:[#allocation3 + $0x4a]]  ;;  %v1201_v55 = vld [vmem:[#allocation2] sm:$0x3f] }
 0x3ab   : > { %v940_v37 = vrot.slane %v932_v18, %v2746_v14  ;;  %v2244_v7 = vrot.slane %v1123_v20, 9  ;;  %v2235_v2 = vrot.slane %v1039_v21, 9  ;;  %v1095_v5 = vmul.f32 %v1094_v27, %v1089_v26  ;;  %s2911_s0 = sld [smem:[#allocation3 + $0x4c]]  ;;  %v1341_v16 = vld [vmem:[#allocation2] sm:$0x3f] }
 0x3ac   : > { %885 = vrot.lane.b32.xlu1 %v884_v17, %s2512_s15  ;;  %v1176_v41 = vstv %s2837_s18  ;;  %v1121_v0 = vmul.f32 %v1120_v8, %v1117_v60  ;;  %v1037_v1 = vmul.f32 %v1036_v25, %v1033_v63  ;;  %v1092_v42 = vstv %s2846_s20  ;;  %s2904_s18 = sld [smem:[#allocation3 + $0x16]]  ;;  %v1257_v18 = vld [vmem:[#allocation2] sm:$0x3f]  ;;  %s2520_s15 = smov 96  }
 0x3ad   : > { %969 = vrot.lane.b32.xlu0 %v968_v12, %s2511_s14  ;;  %v1290_v43 = vstv %s2872_s9  ;;  %v1080_v44 = vrot.slane %v1072_v32, %v2746_v14  ;;  %v2250_v45 = vrot.slane %v1179_v11, 9  ;;  %v1235_v46 = vmul.f32 %v1234_v28, %v1229_v39  ;;  %s2907_s20 = sld [smem:[#allocation3 + $0x47]]  ;;  %s2517_s9 = smov 95   ;;  %v1397_v32 = vld [vmem:[#allocation2] sm:$0x3f] }
 0x3ae   : > { %v1151_v47 = vmul.f32 %v1150_v29, %v1145_v40  ;;  %v996_v48 = vrot.slane %v988_v10, %v2746_v14  ;;  %v1128_v49 = vadd.f32 %v2244_v7, %v1121_v0  ;;  %v1044_v50 = vadd.f32 %v2235_v2, %v1037_v1  ;;  %s2915_s28 = sld [smem:[#allocation3 + $0x49]]  ;;  %v1313_v7 = vld [vmem:[#allocation2] sm:$0x3f]  ;;  %s2519_s14 = smov 93  }
 0x3af   : > { %v2241_v51 = vrot.slane %v1095_v5, 9  ;;  %v1177_v53 = vmul.f32 %v1176_v41, %v1173_v22  ;;  %v1232_v54 = vstv %s2853_s26  ;;  %v1206_v56 = vstv %s2879_s1  ;;  %s2917_s26 = sld [smem:[#allocation3 + $0x1b]] }
 0x3b0   : > { %941 = vrot.lane.b32.xlu1 %v940_v37, %s2514_s22  ;;  %v1093_v57 = vmul.f32 %v1092_v42, %v1089_v26  ;;  %v1148_v58 = vstv %s2863_s29  ;;  %v1288_v59 = vstv %s2867_s30  ;;  %v2256_v62 = vrot.slane %v1235_v46, 9  ;;  %s2921_s29 = sld [smem:[#allocation3 + $0x18]]  ;;  %s2522_s22 = smov 94  }
 0x3b1   : > { %1025 = vrot.lane.b32.xlu0 %v1024_v19, %s2513_s21  ;;  %v1184_v60 = vadd.f32 %v2250_v45, %v1177_v53  ;;  %v2247_v63 = vrot.slane %v1151_v47, 9  ;;  %v1291_v3 = vmul.f32 %v1290_v43, %v1285_v52  ;;  %v1136_v4 = vrot.slane %v1128_v49, %v2746_v14  ;;  %s2925_s30 = sld [smem:[#allocation3 + $0x1d]]  ;;  %v1453_v47 = vld [vmem:[#allocation2] sm:$0x3f]  ;;  %s2521_s21 = smov 91  }
 0x3b2   : > { %v1052_v8 = vrot.slane %v1044_v50, %v2746_v14  ;;  %v1100_v9 = vadd.f32 %v2241_v51, %v1093_v57  ;;  %v1207_v12 = vmul.f32 %v1206_v56, %v1201_v55  ;;  %v1233_v13 = vmul.f32 %v1232_v54, %v1229_v39  ;;  %s2932_s1 = sld [smem:[#allocation3 + $0x1a]] }
 0x3b3   : > { %v1149_v15 = vmul.f32 %v1148_v58, %v1145_v40  ;;  %v1346_v17 = vstv %s2886_s13  ;;  %v1262_v20 = vstv %s2893_s16  ;;  %v1204_v21 = vstv %s2876_s11  ;;  %s2935_s11 = sld [smem:[#allocation3 + $0x4b]] }
 0x3b4   : > { %997 = vrot.lane.b32.xlu1 %v996_v48, %s2516_s27  ;;  %v1402_v22 = vstv %s2901_s23  ;;  %v1192_v23 = vrot.slane %v1184_v60, %v2746_v14  ;;  %v1240_v24 = vadd.f32 %v2256_v62, %v1233_v13  ;;  %v2262_v26 = vrot.slane %v1291_v3, 9  ;;  %s2940_s13 = sld [smem:[#allocation3 + $0x1f]]  ;;  %v1369_v48 = vld [vmem:[#allocation2] sm:$0x3f] }
 0x3b5   : > { %1081 = vrot.lane.b32.xlu0 %v1080_v44, %s2515_s2  ;;  %v1156_v25 = vadd.f32 %v2247_v63, %v1149_v15  ;;  %v1108_v27 = vrot.slane %v1100_v9, %v2746_v14  ;;  %v2253_v28 = vrot.slane %v1207_v12, 9  ;;  %v1347_v29 = vmul.f32 %v1346_v17, %v1341_v16  ;;  %s2944_s16 = sld [smem:[#allocation3 + $0x50]]  ;;  %v1509_v63 = vld [vmem:[#allocation2] sm:$0x3f]  ;;  %s2524_s2 = smov 92  }
 0x3b6   : > { %v1263_v19 = vmul.f32 %v1262_v20, %v1257_v18  ;;  %v1289_v10 = vmul.f32 %v1288_v59, %v1285_v52  ;;  %v1344_v11 = vstv %s2882_s12  ;;  %v1260_v37 = vstv %s2890_s17  ;;  %s2948_s12 = sld [smem:[#allocation3 + $0x1c]] }
 0x3b7   : > { %v1318_v2 = vstv %s2907_s20  ;;  %v1205_v5 = vmul.f32 %v1204_v21, %v1201_v55  ;;  %v1458_v39 = vstv %s2911_s0  ;;  %v1374_v40 = vstv %s2915_s28  ;;  %s2951_s17 = sld [smem:[#allocation3 + $0x4d]]  ;;  %s2523_s0 = smov 80  }
 0x3b8   : > { %1053 = vrot.lane.b32.xlu1 %v1052_v8, %s2518_s8  ;;  %v1248_v41 = vrot.slane %v1240_v24, %v2746_v14  ;;  %v1164_v0 = vrot.slane %v1156_v25, %v2746_v14  ;;  %v1296_v1 = vadd.f32 %v2262_v26, %v1289_v10  ;;  %v1403_v42 = vmul.f32 %v1402_v22, %v1397_v32  ;;  %s2955_s23 = sld [smem:[#allocation3 + $0x52]]  ;;  %v1425_v8 = vld [vmem:[#allocation2] sm:$0x3f] }
 0x3b9   : > { %1137 = vrot.lane.b32.xlu0 %v1136_v4, %s2517_s9  ;;  %v1212_v43 = vadd.f32 %v2253_v28, %v1205_v5  ;;  %v2268_v44 = vrot.slane %v1347_v29, 9  ;;  %v2259_v45 = vrot.slane %v1263_v19, 9  ;;  %v1319_v46 = vmul.f32 %v1318_v2, %v1313_v7  ;;  %s2965_s20 = sld [smem:[#allocation3 + $0x54]]  ;;  %v1481_v29 = vld [vmem:[#allocation2] sm:$0x3f]  ;;  %s2526_s9 = smov 90  }
 0x3ba   : > { %v1400_v49 = vstv %s2897_s19  ;;  %v1345_v50 = vmul.f32 %v1344_v11, %v1341_v16  ;;  %v1261_v51 = vmul.f32 %v1260_v37, %v1257_v18  ;;  %v1316_v52 = vstv %s2904_s18  ;;  %s2958_s19 = sld [smem:[#allocation3 + $0x21]] }
 0x3bb   : > { %v1514_v53 = vstv %s2929_s10  ;;  %v1304_v54 = vrot.slane %v1296_v1, %v2746_v14  ;;  %v2274_v55 = vrot.slane %v1403_v42, 9  ;;  %v1459_v56 = vmul.f32 %v1458_v39, %v1453_v47  ;;  %s2961_s18 = sld [smem:[#allocation3 + $0x4f]] }
 0x3bc   : > { %1109 = vrot.lane.b32.xlu1 %v1108_v27, %s2520_s15  ;;  %v1375_v57 = vmul.f32 %v1374_v40, %v1369_v48  ;;  %v1220_v58 = vrot.slane %v1212_v43, %v2746_v14  ;;  %v1352_v59 = vadd.f32 %v2268_v44, %v1345_v50  ;;  %v1268_v60 = vadd.f32 %v2259_v45, %v1261_v51  ;;  %s2969_s27 = sld [smem:[#allocation3 + $0x51]]  ;;  %v1565_v27 = vld [vmem:[#allocation2] sm:$0x3f]  ;;  %s2528_s15 = smov 79  }
 0x3bd   : > { %1193 = vrot.lane.b32.xlu0 %v1192_v23, %s2519_s14  ;;  %v2265_v62 = vrot.slane %v1319_v46, 9  ;;  %v1401_v3 = vmul.f32 %v1400_v49, %v1397_v32  ;;  %v1456_v4 = vstv %s2917_s26  ;;  %v1430_v9 = vstv %s2935_s11  ;;  %s2971_s28 = sld [smem:[#allocation3 + $0x1e]]  ;;  %v1537_v44 = vld [vmem:[#allocation2] sm:$0x3f]  ;;  %s2527_s14 = smov 76  }
 0x3be   : > { %v1317_v12 = vmul.f32 %v1316_v52, %v1313_v7  ;;  %v1372_v13 = vstv %s2921_s29  ;;  %v1512_v15 = vstv %s2925_s30  ;;  %v2280_v17 = vrot.slane %v1459_v56, 9  ;;  %s2975_s26 = sld [smem:[#allocation3 + $0x23]]  ;;  %s2525_s30 = smov 78  }
 0x3bf   : > { %v1408_v16 = vadd.f32 %v2274_v55, %v1401_v3  ;;  %v2271_v18 = vrot.slane %v1375_v57, 9  ;;  %v1515_v20 = vmul.f32 %v1514_v53, %v1509_v63  ;;  %v1360_v21 = vrot.slane %v1352_v59, %v2746_v14  ;;  %s2979_s29 = sld [smem:[#allocation3 + $0x20]]  ;;  %v1677_v57 = vld [vmem:[#allocation2] sm:$0x3f] }
 0x3c0   : > { %1165 = vrot.lane.b32.xlu1 %v1164_v0, %s2522_s22  ;;  %v1276_v22 = vrot.slane %v1268_v60, %v2746_v14  ;;  %v1324_v23 = vadd.f32 %v2265_v62, %v1317_v12  ;;  %v1431_v24 = vmul.f32 %v1430_v9, %v1425_v8  ;;  %v1457_v25 = vmul.f32 %v1456_v4, %v1453_v47  ;;  %s2983_s8 = sld [smem:[#allocation3 + $0x56]]  ;;  %v1621_v0 = vld [vmem:[#allocation2] sm:$0x3f] }
 0x3c1   : > { %1249 = vrot.lane.b32.xlu0 %v1248_v41, %s2521_s21  ;;  %v1373_v26 = vmul.f32 %v1372_v13, %v1369_v48  ;;  %v1570_v28 = vstv %s2944_s16  ;;  %v1486_v19 = vstv %s2951_s17  ;;  %v1428_v32 = vstv %s2932_s1  ;;  %s2986_s10 = sld [smem:[#allocation3 + $0x25]]  ;;  %s2529_s17 = smov 74  }
 0x3c2   : > { %v1626_v10 = vstv %s2955_s23  ;;  %v1416_v11 = vrot.slane %v1408_v16, %v2746_v14  ;;  %v1464_v37 = vadd.f32 %v2280_v17, %v1457_v25  ;;  %v2286_v2 = vrot.slane %v1515_v20, 9  ;;  %s2989_s1 = sld [smem:[#allocation3 + $0x22]]  ;;  %s2530_s21 = smov 77  }
 0x3c3   : > { %v1380_v7 = vadd.f32 %v2271_v18, %v1373_v26  ;;  %v1332_v5 = vrot.slane %v1324_v23, %v2746_v14  ;;  %v2277_v39 = vrot.slane %v1431_v24, 9  ;;  %v1571_v40 = vmul.f32 %v1570_v28, %v1565_v27  ;;  %s2994_s11 = sld [smem:[#allocation3 + $0x53]]  ;;  %v1733_v18 = vld [vmem:[#allocation2] sm:$0x3f] }
 0x3c4   : > { %1221 = vrot.lane.b32.xlu1 %v1220_v58, %s2524_s2  ;;  %v1487_v41 = vmul.f32 %v1486_v19, %v1481_v29  ;;  %v1513_v1 = vmul.f32 %v1512_v15, %v1509_v63  ;;  %v1568_v42 = vstv %s2940_s13  ;;  %v1484_v43 = vstv %s2948_s12  ;;  %s2998_s16 = sld [smem:[#allocation3 + $0x27]]  ;;  %v1593_v58 = vld [vmem:[#allocation2] sm:$0x3f] }
 0x3c5   : > { %1305 = vrot.lane.b32.xlu0 %v1304_v54, %s2523_s0  ;;  %v1542_v45 = vstv %s2961_s18  ;;  %v1429_v46 = vmul.f32 %v1428_v32, %v1425_v8  ;;  %v1682_v47 = vstv %s2965_s20  ;;  %v1598_v48 = vstv %s2969_s27  ;;  %s3002_s13 = sld [smem:[#allocation3 + $0x58]]  ;;  %s2531_s20 = smov 63  }
 0x3c6   : > { %v1472_v49 = vrot.slane %v1464_v37, %v2746_v14  ;;  %v1388_v50 = vrot.slane %v1380_v7, %v2746_v14  ;;  %v1520_v51 = vadd.f32 %v2286_v2, %v1513_v1  ;;  %v1627_v52 = vmul.f32 %v1626_v10, %v1621_v0  ;;  %s3005_s12 = sld [smem:[#allocation3 + $0x55]]  ;;  %s2532_s0 = smov 75  }
 0x3c7   : > { %v1436_v53 = vadd.f32 %v2277_v39, %v1429_v46  ;;  %v2292_v54 = vrot.slane %v1571_v40, 9  ;;  %v2283_v55 = vrot.slane %v1487_v41, 9  ;;  %v1543_v56 = vmul.f32 %v1542_v45, %v1537_v44  ;;  %s3009_s22 = sld [smem:[#allocation3 + $0x5a]]  ;;  %v1705_v40 = vld [vmem:[#allocation2] sm:$0x3f] }
 0x3c8   : > { %1277 = vrot.lane.b32.xlu1 %v1276_v22, %s2526_s9  ;;  %v1624_v59 = vstv %s2958_s19  ;;  %v1569_v60 = vmul.f32 %v1568_v42, %v1565_v27  ;;  %v1485_v62 = vmul.f32 %v1484_v43, %v1481_v29  ;;  %v1540_v63 = vstv %s2971_s28  ;;  %s3012_s23 = sld [smem:[#allocation3 + $0x24]]  ;;  %v1649_v22 = vld [vmem:[#allocation2] sm:$0x3f] }
 0x3c9   : > { %1361 = vrot.lane.b32.xlu0 %v1360_v21, %s2525_s30  ;;  %v1738_v3 = vstv %s2983_s8  ;;  %v1528_v4 = vrot.slane %v1520_v51, %v2746_v14  ;;  %v2298_v8 = vrot.slane %v1627_v52, 9  ;;  %v1683_v9 = vmul.f32 %v1682_v47, %v1677_v57  ;;  %s3015_s19 = sld [smem:[#allocation3 + $0x57]] }
 0x3ca   : > { %v1599_v12 = vmul.f32 %v1598_v48, %v1593_v58  ;;  %v1444_v13 = vrot.slane %v1436_v53, %v2746_v14  ;;  %v1576_v15 = vadd.f32 %v2292_v54, %v1569_v60  ;;  %v1492_v16 = vadd.f32 %v2283_v55, %v1485_v62  ;;  %s3019_s18 = sld [smem:[#allocation3 + $0x5c]]  ;;  %v1761_v54 = vld [vmem:[#allocation2] sm:$0x3f] }
 0x3cb   : > { %v2289_v17 = vrot.slane %v1543_v56, 9  ;;  %v1625_v20 = vmul.f32 %v1624_v59, %v1621_v0  ;;  %v1680_v21 = vstv %s2975_s26  ;;  %v1654_v23 = vstv %s2994_s11  ;;  %s3023_s2 = sld [smem:[#allocation3 + $0x59]]  ;;  %s2533_s26 = smov 61  }
 0x3cc   : > { %1333 = vrot.lane.b32.xlu1 %v1332_v5, %s2528_s15  ;;  %v1541_v24 = vmul.f32 %v1540_v63, %v1537_v44  ;;  %v1596_v25 = vstv %s2979_s29  ;;  %v1736_v26 = vstv %s2986_s10  ;;  %v2304_v28 = vrot.slane %v1683_v9, 9  ;;  %s3027_s27 = sld [smem:[#allocation3 + $0x29]]  ;;  %v1789_v5 = vld [vmem:[#allocation2] sm:$0x3f]  ;;  %s2534_s29 = smov 64  }
 0x3cd   : > { %1417 = vrot.lane.b32.xlu0 %v1416_v11, %s2527_s14  ;;  %v1632_v27 = vadd.f32 %v2298_v8, %v1625_v20  ;;  %v2295_v29 = vrot.slane %v1599_v12, 9  ;;  %v1739_v19 = vmul.f32 %v1738_v3, %v1733_v18  ;;  %v1584_v32 = vrot.slane %v1576_v15, %v2746_v14  ;;  %s3031_s28 = sld [smem:[#allocation3 + $0x26]]  ;;  %s2536_s11 = smov 62   ;;  %v1900_v12 = vld [vmem:[#allocation2] sm:$0x3f] }
 0x3ce   : > { %v1500_v10 = vrot.slane %v1492_v16, %v2746_v14  ;;  %v1548_v11 = vadd.f32 %v2289_v17, %v1541_v24  ;;  %v1655_v37 = vmul.f32 %v1654_v23, %v1649_v22  ;;  %v1681_v7 = vmul.f32 %v1680_v21, %v1677_v57  ;;  %s3035_s30 = sld [smem:[#allocation3 + $0x5e]] }
 0x3cf   : > { %v1597_v2 = vmul.f32 %v1596_v25, %v1593_v58  ;;  %v1794_v39 = vstv %s3002_s13  ;;  %v1710_v41 = vstv %s3005_s12  ;;  %v1652_v0 = vstv %s2989_s1  ;;  %s3038_s9 = sld [smem:[#allocation3 + $0x2b]]  ;;  %s2535_s1 = smov 59  }
 0x3d0   : > { %1389 = vrot.lane.b32.xlu1 %v1388_v50, %s2530_s21  ;;  %v1850_v1 = vstv %s3009_s22  ;;  %v1640_v42 = vrot.slane %v1632_v27, %v2746_v14  ;;  %v1688_v43 = vadd.f32 %v2304_v28, %v1681_v7  ;;  %v2310_v45 = vrot.slane %v1739_v19, 9  ;;  %v1845_v50 = vld [vmem:[#allocation2] sm:$0x3f]  ;;  %s3041_s8 = sld [smem:[#allocation3 + $0x28]]  ;;  %s2537_s13 = smov 48  }
 0x3d1   : > { %1473 = vrot.lane.b32.xlu0 %v1472_v49, %s2529_s17  ;;  %v1604_v44 = vadd.f32 %v2295_v29, %v1597_v2  ;;  %v1556_v46 = vrot.slane %v1548_v11, %v2746_v14  ;;  %v2301_v47 = vrot.slane %v1655_v37, 9  ;;  %v1795_v48 = vmul.f32 %v1794_v39, %v1789_v5  ;;  %s3046_s10 = sld [smem:[#allocation3 + $0x5b]]  ;;  %s2538_s12 = smov 60   ;;  %v1956_v29 = vld [vmem:[#allocation2] sm:$0x3f] }
 0x3d2   : > { %v1711_v49 = vmul.f32 %v1710_v41, %v1705_v40  ;;  %v1737_v51 = vmul.f32 %v1736_v26, %v1733_v18  ;;  %v1792_v52 = vstv %s2998_s16  ;;  %v1708_v53 = vstv %s3012_s23  ;;  %s3050_s14 = sld [smem:[#allocation3 + $0x2d]]  ;;  %s2539_s23 = smov 46  }
 0x3d3   : > { %v1766_v55 = vstv %s3015_s19  ;;  %v1653_v56 = vmul.f32 %v1652_v0, %v1649_v22  ;;  %v1905_v57 = vstv %s3019_s18  ;;  %v1822_v58 = vstv %s3023_s2  ;;  %s3054_s15 = sld [smem:[#allocation3 + $0x60]]  ;;  %s2540_s19 = smov 58  }
 0x3d4   : > { %1445 = vrot.lane.b32.xlu1 %v1444_v13, %s2532_s0  ;;  %v1696_v59 = vrot.slane %v1688_v43, %v2746_v14  ;;  %v1612_v60 = vrot.slane %v1604_v44, %v2746_v14  ;;  %v1744_v62 = vadd.f32 %v2310_v45, %v1737_v51  ;;  %v1851_v63 = vmul.f32 %v1850_v1, %v1845_v50  ;;  %v1817_v13 = vld [vmem:[#allocation2] sm:$0x3f]  ;;  %s3057_s16 = sld [smem:[#allocation3 + $0x5d]]  ;;  %s2541_s0 = smov 44  }
 0x3d5   : > { %1529 = vrot.lane.b32.xlu0 %v1528_v4, %s2531_s20  ;;  %v1660_v3 = vadd.f32 %v2301_v47, %v1653_v56  ;;  %v2316_v4 = vrot.slane %v1795_v48, 9  ;;  %v2307_v8 = vrot.slane %v1711_v49, 9  ;;  %v1767_v9 = vmul.f32 %v1766_v55, %v1761_v54  ;;  %s3061_s17 = sld [smem:[#allocation3 + $0x2a]]  ;;  %v2012_v45 = vld [vmem:[#allocation2] sm:$0x3f]  ;;  %s2542_s2 = smov 47  }
 0x3d6   : > { %v1848_v15 = vstv %s3027_s27  ;;  %v1793_v16 = vmul.f32 %v1792_v52, %v1789_v5  ;;  %v1709_v17 = vmul.f32 %v1708_v53, %v1705_v40  ;;  %v1764_v18 = vstv %s3031_s28  ;;  %s3065_s21 = sld [smem:[#allocation3 + $0x2f]]  ;;  %v1928_v47 = vld [vmem:[#allocation2] sm:$0x3f]  ;;  %s2543_s28 = smov 42  }
 0x3d7   : > { %v1961_v20 = vstv %s3035_s30  ;;  %v1752_v21 = vrot.slane %v1744_v62, %v2746_v14  ;;  %v2322_v22 = vrot.slane %v1851_v63, 9  ;;  %v1906_v23 = vmul.f32 %v1905_v57, %v1900_v12  ;;  %s3068_s22 = sld [smem:[#allocation3 + $0x5f]]  ;;  %s2545_s30 = smov 31  }
 0x3d8   : > { %1501 = vrot.lane.b32.xlu1 %v1500_v10, %s2534_s29  ;;  %v1823_v24 = vmul.f32 %v1822_v58, %v1817_v13  ;;  %v1668_v25 = vrot.slane %v1660_v3, %v2746_v14  ;;  %v1800_v26 = vadd.f32 %v2316_v4, %v1793_v16  ;;  %v1716_v27 = vadd.f32 %v2307_v8, %v1709_v17  ;;  %s3072_s18 = sld [smem:[#allocation3 + $0x2c]] }
 0x3d9   : > { %1585 = vrot.lane.b32.xlu0 %v1584_v32, %s2533_s26  ;;  %v2313_v28 = vrot.slane %v1767_v9, 9  ;;  %v1849_v19 = vmul.f32 %v1848_v15, %v1845_v50  ;;  %v1873_v32 = vld [vmem:[#allocation2] sm:$0x3f]  ;;  %v1878_v10 = vstv %s3046_s10  ;;  %v1765_v11 = vmul.f32 %v1764_v18, %v1761_v54  ;;  %s3074_s20 = sld [smem:[#allocation3 + $0x61]]  ;;  %s2544_s26 = smov 45  }
 0x3da   : > { %v1903_v37 = vstv %s3038_s9  ;;  %v1820_v7 = vstv %s3041_s8  ;;  %v2328_v5 = vrot.slane %v1906_v23, 9  ;;  %v2319_v39 = vrot.slane %v1823_v24, 9  ;;  %s3083_s27 = sld [smem:[#allocation3 + $0x2e]]  ;;  %s2546_s9 = smov 43  }
 0x3db   : > { %v1856_v2 = vadd.f32 %v2322_v22, %v1849_v19  ;;  %v1962_v40 = vmul.f32 %v1961_v20, %v1956_v29  ;;  %v1808_v41 = vrot.slane %v1800_v26, %v2746_v14  ;;  %v1724_v0 = vrot.slane %v1716_v27, %v2746_v14  ;;  %s3091_s29 = sld [smem:[#allocation3 + $0x30]]  ;;  %v2040_v20 = vld [vmem:[#allocation2] sm:$0x3f]  ;;  %s2547_s8 = smov 29  }
 0x3dc   : > { %1557 = vrot.lane.b32.xlu1 %v1556_v46, %s2536_s11  ;;  %v1772_v1 = vadd.f32 %v2313_v28, %v1765_v11  ;;  %v1904_v43 = vmul.f32 %v1903_v37, %v1900_v12  ;;  %v1821_v44 = vmul.f32 %v1820_v7, %v1817_v13  ;;  %v2017_v46 = vstv %s3054_s15  ;;  %s2548_s10 = smov 32   ;;  %s2550_s11 = smov 30  }
 0x3dd   : > { %1641 = vrot.lane.b32.xlu0 %v1640_v42, %s2535_s1  ;;  %v1879_v42 = vmul.f32 %v1878_v10, %v1873_v32  ;;  %v1933_v48 = vstv %s3057_s16  ;;  %v1959_v49 = vstv %s3050_s14  ;;  %v1876_v50 = vstv %s3061_s17  ;;  %s2549_s1 = smov 27   ;;  %s2551_s14 = smov 28  }
 0x3de   : > { %v1864_v51 = vrot.slane %v1856_v2, %v2746_v14  ;;  %v1911_v52 = vadd.f32 %v2328_v5, %v1904_v43  ;;  %v1828_v53 = vadd.f32 %v2319_v39, %v1821_v44  ;;  %v2334_v54 = vrot.slane %v1962_v40, 9  ;;  %s2552_s15 = smov 26  }
 0x3df   : > { %v1780_v55 = vrot.slane %v1772_v1, %v2746_v14  ;;  %v2325_v56 = vrot.slane %v1879_v42, 9  ;;  %v2018_v57 = vmul.f32 %v2017_v46, %v2012_v45  ;;  %v1934_v58 = vmul.f32 %v1933_v48, %v1928_v47  ;;  %v3107_v1 = vld [vmem:[%s3401_s6 + $0x5] ss:$8 sm:$0x3] }
 0x3e0   : > { %1613 = vrot.lane.b32.xlu1 %v1612_v60, %s2538_s12  ;;  %v1984_v60 = vld [vmem:[#allocation2] sm:$0x3f]  ;;  %v1989_v62 = vstv %s3068_s22  ;;  %v1877_v63 = vmul.f32 %v1876_v50, %v1873_v32  ;;  %v2015_v3 = vstv %s3065_s21  ;;  %v1931_v4 = vstv %s3072_s18  ;;  %s2198_s18 = sld [smem:[#allocation3 + $0x31]] }
 0x3e1   : > { %1697 = vrot.lane.b32.xlu0 %v1696_v59, %s2537_s13  ;;  %v1960_v59 = vmul.f32 %v1959_v49, %v1956_v29  ;;  %v1919_v8 = vrot.slane %v1911_v52, %v2746_v14  ;;  %v1836_v9 = vrot.slane %v1828_v53, %v2746_v14  ;;  %v2045_v13 = vstv %s3074_s20  ;;  %s703_s20 = sld [smem:[#allocation3]] }
 0x3e2   : > { %v1884_v15 = vadd.f32 %v2325_v56, %v1877_v63  ;;  %v2340_v16 = vrot.slane %v2018_v57, 9  ;;  %v2331_v17 = vrot.slane %v1934_v58, 9  ;;  %v1990_v18 = vmul.f32 %v1989_v62, %v1984_v60 }
 0x3e3   : > { %v1967_v12 = vadd.f32 %v2334_v54, %v1960_v59  ;;  %v1932_v22 = vmul.f32 %v1931_v4, %v1928_v47  ;;  %v1987_v24 = vstv %s3083_s27  ;;  %v2043_v32 = vstv %s3091_s29  ;;  %v3132_v59 = vld [vmem:[%s3401_s6 + $0x6] ss:$8 sm:$0x3] }
 0x3e4   : > { %1669 = vrot.lane.b32.xlu1 %v1668_v25, %s2540_s19  ;;  %v2046_v25 = vmul.f32 %v2045_v13, %v2040_v20  ;;  %v1892_v26 = vrot.slane %v1884_v15, %v2746_v14  ;;  %v2337_v29 = vrot.slane %v1990_v18, 9  ;;  %v1988_v19 = vmul.f32 %v1987_v24, %v1984_v60 }
 0x3e5   : > { %1753 = vrot.lane.b32.xlu0 %v1752_v21, %s2539_s23  ;;  %v2016_v21 = vmul.f32 %v2015_v3, %v2012_v45  ;;  %v1975_v23 = vrot.slane %v1967_v12, %v2746_v14  ;;  %v1939_v28 = vadd.f32 %v2331_v17, %v1932_v22  ;;  %v2044_v2 = vmul.f32 %v2043_v32, %v2040_v20  ;;  %v3112_v45 = vld [vmem:[%s3401_s6 + $0x1] ss:$8 sm:$0x3] }
 0x3e6   : > { %v1995_v37 = vadd.f32 %v2337_v29, %v1988_v19  ;;  %v2343_v7 = vrot.slane %v2046_v25, 9  ;;  %v707_v24 = vstv %s2198_s18  ;;  %v702_v25 = vld [vmem:[#allocation2] sm:$0xf] }
 0x3e7   : > { %v2023_v27 = vadd.f32 %v2340_v16, %v2016_v21  ;;  %v1947_v11 = vrot.slane %v1939_v28, %v2746_v14  ;;  %v708_v28 = vmul.f32 %v707_v24, %v702_v25  ;;  %v705_v32 = vstv %s703_s20 }
 0x3e8   : > { %1725 = vrot.lane.b32.xlu1 %v1724_v0, %s2542_s2  ;;  %v2003_v5 = vrot.slane %v1995_v37, %v2746_v14  ;;  %v2051_v39 = vadd.f32 %v2343_v7, %v2044_v2 }
 0x3e9   : > { %1809 = vrot.lane.b32.xlu0 %v1808_v41, %s2541_s0  ;;  %v2031_v10 = vrot.slane %v2023_v27, %v2746_v14 }
 0x3ea   : > { %v2059_v40 = vrot.slane %v2051_v39, %v2746_v14 }
 0x3ec   : > { %1781 = vrot.lane.b32.xlu1 %v1780_v55, %s2544_s26  ;;  %v3125_v55 = vld [vmem:[%s3401_s6 + $0x2] ss:$8 sm:$0x3] }
 0x3ed   : > { %1865 = vrot.lane.b32.xlu0 %v1864_v51, %s2543_s28 }
 0x3f0   : > { %1837 = vrot.lane.b32.xlu1 %v1836_v9, %s2546_s9 }
 0x3f1   : > { %1920 = vrot.lane.b32.xlu0 %v1919_v8, %s2545_s30  ;;  %s3415_s30 = sshll.u32 %s3417_s25, 6 }
 0x3f4   : > { %1893 = vrot.lane.b32.xlu1 %v1892_v26, %s2548_s10  ;;  %s292_s10 = scalar_lea.vmem %s3402_s7, %s3415_s30 }
 0x3f5   : > { %1976 = vrot.lane.b32.xlu0 %v1975_v23, %s2547_s8 }
 0x3f8   : > { %1948 = vrot.lane.b32.xlu1 %v1947_v11, %s2550_s11  ;;  %v706_v11 = vmul.f32 %v705_v32, %v702_v25 }
 0x3f9   : > { %2032 = vrot.lane.b32.xlu0 %v2031_v10, %s2549_s1  ;;  %v2199_v10 = vrot.slane %v708_v28, 9 }
 0x3fb   : > { %v713_v2 = vadd.f32 %v2199_v10, %v706_v11 }
 0x3fc   : > { %2004 = vrot.lane.b32.xlu1 %v2003_v5, %s2551_s14 }
 0x400   : > { %2060 = vrot.lane.b32.xlu1 %v2059_v40, %s2552_s15 }
 0x412   : > { %v3102_v41 = vpop.permute.xlu1 %829 }
 0x413   : > { %v774_v0 = vpop.permute.xlu0 %773  ;;  %v831_v5 = vrot.slane %v3102_v41, 1 }
 0x414   : > { %v775_v53 = vrot.slane %v774_v0, 1 }
 0x416   : > { %v746_v43 = vpop.permute.xlu1 %745  ;;  %v777_v58 = vsel %vm776_vm15, %v774_v0, %v775_v53  ;;  %vm1168_vm15 = vcmask 769024  }
 0x417   : > { %v858_v42 = vpop.permute.xlu0 %857  ;;  %v747_v46 = vrot.slane %v746_v43, 1  ;;  %v779_v63 = vmul.f32 %v3125_v55, %v777_v58 }
 0x418   : > { %v859_v44 = vrot.slane %v858_v42, 1 }
 0x419   : > { %v749_v48 = vsel %vm748_vm14, %v746_v43, %v747_v46  ;;  %v3184_v43 = vld [vmem:[%s3401_s6] ss:$8 sm:$0x3]  ;;  %v3190_v46 = vld [vmem:[%s3401_s6 + $0x4] ss:$8 sm:$0x3] }
 0x41a   : > { %v861_v47 = vsel %vm860_vm13, %v858_v42, %v859_v44  ;;  %v751_v50 = vmul.f32 %v3112_v45, %v749_v48  ;;  %v3118_v52 = vpop.permute.xlu1 %801  ;;  %v721_v44 = vrot.slane %v713_v2, %v2746_v14  ;;  %vm1112_vm13 = vcmask 785408  }
 0x41b   : > { %v863_v49 = vmul.f32 %v3107_v1, %v861_v47  ;;  %v3116_v51 = vpop.permute.xlu0 %913  ;;  %v803_v42 = vrot.slane %v3118_v52, 1  ;;  %v833_v47 = vsel %vm832_vm1, %v3102_v41, %v831_v5  ;;  %v3207_v41 = vld [vmem:[%s3401_s6 + $0x3] ss:$8 sm:$0x3]  ;;  %vm1252_vm14 = vcmask 744448  }
 0x41c   : > { %v915_v39 = vrot.slane %v3116_v51, 1  ;;  %vm1224_vm1 = vcmask 752640  }
 0x41d   : > { %v3120_v54 = vadd.f32 %v863_v49, %v751_v50 }
 0x41e   : > { %v886_v57 = vpop.permute.xlu1 %885  ;;  %v917_v49 = vsel %vm916_vm3, %v3116_v51, %v915_v39  ;;  %vm1364_vm3 = vcmask 637952  }
 0x41f   : > { %v3127_v56 = vpop.permute.xlu0 %969  ;;  %v887_v60 = vrot.slane %v886_v57, 1  ;;  %v919_v24 = vmul.f32 %v917_v49, %v3184_v43 }
 0x420   : > { %v971_v48 = vrot.slane %v3127_v56, 1 }
 0x421   : > { %v889_v62 = vsel %vm888_vm0, %v886_v57, %v887_v60  ;;  %v805_v60 = vsel %vm804_vm4, %v3118_v52, %v803_v42  ;;  %vm1308_vm0 = vcmask 654336   ;;  %vm1280_vm4 = vcmask 736256  }
 0x422   : > { %v891_v3 = vmul.f32 %v3132_v59, %v889_v62  ;;  %v3138_v8 = vpop.permute.xlu1 %941  ;;  %v973_v25 = vsel %vm972_vm5, %v3127_v56, %v971_v48  ;;  %v807_v32 = vmul.f32 %v3207_v41, %v805_v60  ;;  %vm1420_vm5 = vcmask 621568  }
 0x423   : > { %v3136_v4 = vpop.permute.xlu0 %1025  ;;  %v943_v50 = vrot.slane %v3138_v8, 1 }
 0x424   : > { %v3140_v9 = vadd.f32 %v891_v3, %v779_v63  ;;  %v1027_v14 = vrot.slane %v3136_v4, 1  ;;  %v723_v63 = vmul.f32 %v721_v44, %v3184_v43  ;;  %v835_v3 = vmul.f32 %v3190_v46, %v833_v47 }
 0x425   : > { %v945_v11 = vsel %vm944_vm7, %v3138_v8, %v943_v50  ;;  %v975_v8 = vmul.f32 %v3125_v55, %v973_v25  ;;  %vm1476_vm7 = vcmask 605184  }
 0x426   : > { %v3144_v13 = vpop.permute.xlu1 %997  ;;  %v1029_v10 = vsel %vm1028_vm6, %v3136_v4, %v1027_v14  ;;  %v836_v47 = vadd.f32 %v835_v3, %v723_v63  ;;  %v947_v48 = vmul.f32 %v3112_v45, %v945_v11  ;;  %vm1336_vm6 = vcmask 646144  }
 0x427   : > { %v3142_v12 = vpop.permute.xlu0 %1081  ;;  %v999_v51 = vrot.slane %v3144_v13, 1  ;;  %v976_v3 = vadd.f32 %v975_v8, %v3120_v54 }
 0x428   : > { %v1083_v53 = vrot.slane %v3142_v12, 1 }
 0x429   : > { %v1001_v39 = vsel %vm1000_vm9, %v3144_v13, %v999_v51  ;;  %vm1532_vm9 = vcmask 515072  }
 0x42a   : > { %v3148_v16 = vpop.permute.xlu1 %1053  ;;  %v1085_v2 = vsel %vm1084_vm8, %v3142_v12, %v1083_v53  ;;  %v1031_v12 = vmul.f32 %v3190_v46, %v1029_v10  ;;  %v1003_v50 = vmul.f32 %v3207_v41, %v1001_v39  ;;  %vm1392_vm8 = vcmask 629760  }
 0x42b   : > { %v3146_v15 = vpop.permute.xlu0 %1137  ;;  %v1055_v28 = vrot.slane %v3148_v16, 1  ;;  %v1087_v14 = vmul.f32 %v3132_v59, %v1085_v2 }
 0x42c   : > { %v1139_v62 = vrot.slane %v3146_v15, 1  ;;  %v1004_v11 = vadd.f32 %v1003_v50, %v3140_v9 }
 0x42d   : > { %v1057_v49 = vsel %vm1056_vm11, %v3148_v16, %v1055_v28  ;;  %vm1588_vm11 = vcmask 498688   ;;  %v1088_v10 = vadd.f32 %v1087_v14, %v976_v3 }
 0x42e   : > { %v3152_v18 = vpop.permute.xlu1 %1109  ;;  %v1141_v42 = vsel %vm1140_vm10, %v3146_v15, %v1139_v62  ;;  %v920_v15 = vadd.f32 %v919_v24, %v807_v32  ;;  %v1059_v24 = vmul.f32 %v3107_v1, %v1057_v49  ;;  %vm1448_vm10 = vcmask 613376  }
 0x42f   : > { %v3150_v17 = vpop.permute.xlu0 %1193  ;;  %v1111_v44 = vrot.slane %v3152_v18, 1  ;;  %v1143_v53 = vmul.f32 %v3112_v45, %v1141_v42 }
 0x430   : > { %v1195_v52 = vrot.slane %v3150_v17, 1 }
 0x431   : > { %v1113_v16 = vsel %vm1112_vm13, %v3152_v18, %v1111_v44  ;;  %v948_v18 = vadd.f32 %v947_v48, %v836_v47  ;;  %vm1644_vm13 = vcmask 482304  }
 0x432   : > { %v3156_v21 = vpop.permute.xlu1 %1165  ;;  %v1197_v13 = vsel %vm1196_vm12, %v3150_v17, %v1195_v52  ;;  %v1032_v52 = vadd.f32 %v1031_v12, %v920_v15  ;;  %v1115_v54 = vmul.f32 %v1113_v16, %v3184_v43  ;;  %vm1504_vm12 = vcmask 523264  }
 0x433   : > { %v3154_v20 = vpop.permute.xlu0 %1249  ;;  %v1167_v62 = vrot.slane %v3156_v21, 1  ;;  %v1199_v25 = vmul.f32 %v3207_v41, %v1197_v13  ;;  %v1060_v9 = vadd.f32 %v1059_v24, %v948_v18 }
 0x434   : > { %v1251_v4 = vrot.slane %v3154_v20, 1  ;;  %v1144_v44 = vadd.f32 %v1143_v53, %v1032_v52  ;;  %v1116_v14 = vadd.f32 %v1115_v54, %v1004_v11 }
 0x435   : > { %v1200_v12 = vadd.f32 %v1199_v25, %v1088_v10 }
 0x436   : > { %v3160_v23 = vpop.permute.xlu1 %1221  ;;  %v1253_v17 = vsel %vm1252_vm14, %v3154_v20, %v1251_v4  ;;  %v1169_v4 = vsel %vm1168_vm15, %v3156_v21, %v1167_v62  ;;  %vm1560_vm14 = vcmask 506880   ;;  %vm1700_vm15 = vcmask 392192  }
 0x437   : > { %v3158_v22 = vpop.permute.xlu0 %1305  ;;  %v1223_v28 = vrot.slane %v3160_v23, 1  ;;  %v1255_v2 = vmul.f32 %v3107_v1, %v1253_v17  ;;  %v1171_v53 = vmul.f32 %v3125_v55, %v1169_v4 }
 0x438   : > { %v1307_v63 = vrot.slane %v3158_v22, 1 }
 0x439   : > { %v1225_v48 = vsel %vm1224_vm1, %v3160_v23, %v1223_v28  ;;  %v1256_v50 = vadd.f32 %v1255_v2, %v1144_v44  ;;  %vm1672_vm1 = vcmask 474112  }
 0x43a   : > { %v3164_v27 = vpop.permute.xlu1 %1277  ;;  %v1309_v47 = vsel %vm1308_vm0, %v3158_v22, %v1307_v63  ;;  %v1227_v3 = vmul.f32 %v3190_v46, %v1225_v48  ;;  %vm1616_vm0 = vcmask 490496  }
 0x43b   : > { %v3162_v26 = vpop.permute.xlu0 %1361  ;;  %v1279_v20 = vrot.slane %v3164_v27, 1  ;;  %v1311_v16 = vmul.f32 %v1309_v47, %v3184_v43 }
 0x43c   : > { %v1363_v32 = vrot.slane %v3162_v26, 1  ;;  %v1228_v47 = vadd.f32 %v1227_v3, %v1116_v14 }
 0x43d   : > { %v1281_v15 = vsel %vm1280_vm4, %v3164_v27, %v1279_v20  ;;  %v1172_v20 = vadd.f32 %v1171_v53, %v1060_v9  ;;  %v1312_v10 = vadd.f32 %v1311_v16, %v1200_v12  ;;  %vm1784_vm4 = vcmask 367616  }
 0x43e   : > { %v3168_v19 = vpop.permute.xlu1 %1333  ;;  %v1365_v13 = vsel %vm1364_vm3, %v3162_v26, %v1363_v32  ;;  %v1283_v25 = vmul.f32 %v3132_v59, %v1281_v15  ;;  %vm1812_vm3 = vcmask 359424  }
 0x43f   : > { %v3166_v29 = vpop.permute.xlu0 %1417  ;;  %v1335_v49 = vrot.slane %v3168_v19, 1  ;;  %v1367_v24 = vmul.f32 %v3125_v55, %v1365_v13 }
 0x440   : > { %v1419_v8 = vrot.slane %v3166_v29, 1  ;;  %v1284_v48 = vadd.f32 %v1283_v25, %v1172_v20 }
 0x441   : > { %v1337_v28 = vsel %vm1336_vm6, %v3168_v19, %v1335_v49  ;;  %vm1923_vm6 = vcmask 252928  }
 0x442   : > { %v3172_v7 = vpop.permute.xlu1 %1389  ;;  %v1421_v26 = vsel %vm1420_vm5, %v3166_v29, %v1419_v8  ;;  %vm1728_vm5 = vcmask 384000   ;;  %v1368_v8 = vadd.f32 %v1367_v24, %v1256_v50 }
 0x443   : > { %v3170_v37 = vpop.permute.xlu0 %1473  ;;  %v1391_v22 = vrot.slane %v3172_v7, 1  ;;  %v1423_v11 = vmul.f32 %v3190_v46, %v1421_v26 }
 0x444   : > { %v1475_v21 = vrot.slane %v3170_v37, 1 }
 0x445   : > { %v1393_v52 = vsel %vm1392_vm8, %v3172_v7, %v1391_v22  ;;  %vm1840_vm8 = vcmask 351232  }
 0x446   : > { %v3178_v0 = vpop.permute.xlu1 %1445  ;;  %v1477_v29 = vsel %vm1476_vm7, %v3170_v37, %v1475_v21  ;;  %v1339_v37 = vmul.f32 %v3112_v45, %v1337_v28  ;;  %v1395_v12 = vmul.f32 %v3207_v41, %v1393_v52  ;;  %vm1756_vm7 = vcmask 375808  }
 0x447   : > { %v3176_v40 = vpop.permute.xlu0 %1529  ;;  %v1447_v62 = vrot.slane %v3178_v0, 1  ;;  %v1479_v9 = vmul.f32 %v3132_v59, %v1477_v29 }
 0x448   : > { %v1531_v27 = vrot.slane %v3176_v40, 1  ;;  %v1340_v50 = vadd.f32 %v1339_v37, %v1228_v47  ;;  %v1396_v26 = vadd.f32 %v1395_v12, %v1284_v48 }
 0x449   : > { %v1449_v44 = vsel %vm1448_vm10, %v3178_v0, %v1447_v62  ;;  %vm1868_vm10 = vcmask 343040   ;;  %v1480_v16 = vadd.f32 %v1479_v9, %v1368_v8 }
 0x44a   : > { %v3202_v58 = vpop.permute.xlu1 %1501  ;;  %v1533_v7 = vsel %vm1532_vm9, %v3176_v40, %v1531_v27  ;;  %v1451_v13 = vmul.f32 %v3107_v1, %v1449_v44  ;;  %vm2035_vm9 = vcmask 220160  }
 0x44b   : > { %v3200_v57 = vpop.permute.xlu0 %1585  ;;  %v1503_v18 = vrot.slane %v3202_v58, 1 }
 0x44c   : > { %v1587_v63 = vrot.slane %v3200_v57, 1  ;;  %v1452_v28 = vadd.f32 %v1451_v13, %v1340_v50 }
 0x44d   : > { %v1505_v49 = vsel %vm1504_vm12, %v3202_v58, %v1503_v18  ;;  %v1424_v58 = vadd.f32 %v1423_v11, %v1312_v10  ;;  %vm1979_vm12 = vcmask 236544  }
 0x44e   : > { %v3229_v56 = vpop.permute.xlu1 %1557  ;;  %v1589_v4 = vsel %vm1588_vm11, %v3200_v57, %v1587_v63  ;;  %v1535_v57 = vmul.f32 %v3112_v45, %v1533_v7  ;;  %v1507_v27 = vmul.f32 %v1505_v49, %v3184_v43  ;;  %vm1951_vm11 = vcmask 244736  }
 0x44f   : > { %v3227_v5 = vpop.permute.xlu0 %1641  ;;  %v1559_v54 = vrot.slane %v3229_v56, 1  ;;  %v1591_v15 = vmul.f32 %v3207_v41, %v1589_v4 }
 0x450   : > { %v1643_v32 = vrot.slane %v3227_v5, 1  ;;  %v1536_v25 = vadd.f32 %v1535_v57, %v1424_v58 }
 0x451   : > { %v1561_v21 = vsel %vm1560_vm14, %v3229_v56, %v1559_v54  ;;  %v1592_v29 = vadd.f32 %v1591_v15, %v1480_v16  ;;  %v1508_v54 = vadd.f32 %v1507_v27, %v1396_v26  ;;  %vm2063_vm14 = vcmask 211968  }
 0x452   : > { %v3249_v51 = vpop.permute.xlu1 %1613  ;;  %v1645_v40 = vsel %vm1644_vm13, %v3227_v5, %v1643_v32  ;;  %v1563_v56 = vmul.f32 %v3125_v55, %v1561_v21  ;;  %vm2007_vm13 = vcmask 228352  }
 0x453   : > { %v3247_v60 = vpop.permute.xlu0 %1697  ;;  %v1615_v5 = vrot.slane %v3249_v51, 1  ;;  %v1647_v62 = vmul.f32 %v3107_v1, %v1645_v40 }
 0x454   : > { %v1699_v0 = vrot.slane %v3247_v60, 1  ;;  %v1564_v4 = vadd.f32 %v1563_v56, %v1452_v28 }
 0x455   : > { %v1617_v20 = vsel %vm1616_vm0, %v3249_v51, %v1615_v5  ;;  %v1648_v37 = vadd.f32 %v1647_v62, %v1536_v25 }
 0x456   : > { %v3268_v42 = vpop.permute.xlu1 %1669  ;;  %v1701_v63 = vsel %vm1700_vm15, %v3247_v60, %v1699_v0  ;;  %v1619_v51 = vmul.f32 %v3190_v46, %v1617_v20 }
 0x457   : > { %v3266_v39 = vpop.permute.xlu0 %1753  ;;  %v1671_v53 = vrot.slane %v3268_v42, 1  ;;  %v1703_v7 = vmul.f32 %v1701_v63, %v3184_v43 }
 0x458   : > { %v1755_v44 = vrot.slane %v3266_v39, 1  ;;  %v1620_v62 = vadd.f32 %v1619_v51, %v1508_v54 }
 0x459   : > { %v1673_v10 = vsel %vm1672_vm1, %v3268_v42, %v1671_v53 }
 0x45a   : > { %v3288_v17 = vpop.permute.xlu1 %1725  ;;  %v1675_v12 = vmul.f32 %v3132_v59, %v1673_v10  ;;  %v1757_v15 = vsel %vm1756_vm7, %v3266_v39, %v1755_v44 }
 0x45b   : > { %v3286_v23 = vpop.permute.xlu0 %1809  ;;  %v1727_v52 = vrot.slane %v3288_v17, 1  ;;  %v1759_v56 = vmul.f32 %v3125_v55, %v1757_v15 }
 0x45c   : > { %v1811_v3 = vrot.slane %v3286_v23, 1 }
 0x45d   : > { %v1729_v42 = vsel %vm1728_vm5, %v3288_v17, %v1727_v52 }
 0x45e   : > { %v1782_v2 = vpop.permute.xlu1 %1781  ;;  %v1813_v47 = vsel %vm1812_vm3, %v3286_v23, %v1811_v3  ;;  %v1731_v17 = vmul.f32 %v3112_v45, %v1729_v42 }
 0x45f   : > { %v3308_v19 = vpop.permute.xlu0 %1865  ;;  %v1783_v24 = vrot.slane %v1782_v2, 1  ;;  %v1815_v21 = vmul.f32 %v3190_v46, %v1813_v47 }
 0x460   : > { %v1867_v48 = vrot.slane %v3308_v19, 1 }
 0x461   : > { %v1785_v8 = vsel %vm1784_vm4, %v1782_v2, %v1783_v24  ;;  %v1704_v2 = vadd.f32 %v1703_v7, %v1592_v29  ;;  %v1732_v29 = vadd.f32 %v1731_v17, %v1620_v62 }
 0x462   : > { %v1838_v14 = vpop.permute.xlu1 %1837  ;;  %v1787_v58 = vmul.f32 %v3207_v41, %v1785_v8  ;;  %v1869_v16 = vsel %vm1868_vm10, %v3308_v19, %v1867_v48 }
 0x463   : > { %v1921_v22 = vpop.permute.xlu0 %1920  ;;  %v1839_v9 = vrot.slane %v1838_v14, 1  ;;  %v1816_v24 = vadd.f32 %v1815_v21, %v1704_v2  ;;  %v1871_v19 = vmul.f32 %v3132_v59, %v1869_v16 }
 0x464   : > { %v1922_v11 = vrot.slane %v1921_v22, 1 }
 0x465   : > { %v1841_v50 = vsel %vm1840_vm8, %v1838_v14, %v1839_v9 }
 0x466   : > { %v1894_v32 = vpop.permute.xlu1 %1893  ;;  %v1924_v0 = vsel %vm1923_vm6, %v1921_v22, %v1922_v11  ;;  %v1676_v22 = vadd.f32 %v1675_v12, %v1564_v4  ;;  %v1843_v25 = vmul.f32 %v3107_v1, %v1841_v50 }
 0x467   : > { %v1977_v18 = vpop.permute.xlu0 %1976  ;;  %v1895_v60 = vrot.slane %v1894_v32, 1  ;;  %v1926_v26 = vmul.f32 %v3112_v45, %v1924_v0 }
 0x468   : > { %v1978_v5 = vrot.slane %v1977_v18, 1  ;;  %v1788_v14 = vadd.f32 %v1787_v58, %v1676_v22  ;;  %v1844_v7 = vadd.f32 %v1843_v25, %v1732_v29 }
 0x469   : > { %v1896_v57 = vsel %vm344_vm2, %v1894_v32, %v1895_v60  ;;  %v1927_v52 = vadd.f32 %v1926_v26, %v1816_v24  ;;  %v1760_v60 = vadd.f32 %v1759_v56, %v1648_v37 }
 0x46a   : > { %v1949_v40 = vpop.permute.xlu1 %1948  ;;  %v1898_v27 = vmul.f32 %v1896_v57, %v3184_v43  ;;  %v1980_v45 = vsel %vm1979_vm12, %v1977_v18, %v1978_v5 }
 0x46b   : > { %v2033_v49 = vpop.permute.xlu0 %2032  ;;  %v1950_v13 = vrot.slane %v1949_v40, 1  ;;  %v1982_v44 = vmul.f32 %v3207_v41, %v1980_v45  ;;  %v1872_v8 = vadd.f32 %v1871_v19, %v1760_v60  ;;  %v2080_v41 = vsub.s32 0, %v2743_v61 }
 0x46c   : > { %v2034_v23 = vrot.slane %v2033_v49, 1  ;;  %v1899_v32 = vadd.f32 %v1898_v27, %v1788_v14 }
 0x46d   : > { %v1952_v63 = vsel %vm1951_vm11, %v1949_v40, %v1950_v13  ;;  %v1983_v12 = vadd.f32 %v1982_v44, %v1872_v8  ;;  %v2084_v40 = vsub.s32 1, %v2743_v61 }
 0x46e   : > { %v2036_v53 = vsel %vm2035_vm9, %v2033_v49, %v2034_v23  ;;  %v2005_v39 = vpop.permute.xlu1 %2004  ;;  %v1954_v20 = vmul.f32 %v3125_v55, %v1952_v63 }
 0x46f   : > { %v2006_v3 = vrot.slane %v2005_v39, 1  ;;  %v2038_v28 = vmul.f32 %v3107_v1, %v2036_v53 }
 0x470   : > { %v1955_v18 = vadd.f32 %v1954_v20, %v1844_v7 }
 0x471   : > { %v2008_v43 = vsel %vm2007_vm13, %v2005_v39, %v2006_v3  ;;  %v2039_v1 = vadd.f32 %v2038_v28, %v1927_v52 }
 0x472   : > { %v2010_v10 = vmul.f32 %v3190_v46, %v2008_v43  ;;  %v2061_v11 = vpop.permute.xlu1 %2060 }
 0x473   : > { %v2062_v54 = vrot.slane %v2061_v11, 1 }
 0x474   : > { %v2011_v4 = vadd.f32 %v2010_v10, %v1899_v32 }
 0x475   : > { %v2064_v47 = vsel %vm2063_vm14, %v2061_v11, %v2062_v54 }
 0x476   : > { %v2069_v9 = vadd.f32 %v2039_v1, %v2011_v4  ;;  %v2066_v51 = vmul.f32 %v3132_v59, %v2064_v47 }
 0x478   : > { %v2067_v55 = vadd.f32 %v2066_v51, %v1955_v18 }
 0x47a   : > { %v2068_v42 = vadd.f32 %v2067_v55, %v1983_v12 }
 0x47c   : > { %v2070_v46 = vadd.f32 %v2069_v9, %v2068_v42 }
 0x47e   : > { %v2344_v48 = vmul.f32 -1.442695, %v2070_v46 }
 0x480   : > { %2468 = vpow2.f32 %v2344_v48 }
 0x48d   : > { %v2469_v37 = vpop.eup %2468 }
 0x48e   : > { %v2074_v49 = vadd.f32 1.0, %v2469_v37 }
 0x490   : > { %2470 = vrcp.f32 %v2074_v49 }
 0x49d   : > { %v2471_v0 = vpop.eup %2470 }
 0x49e   : > { %v2081_v57 = vrot.slane %v2471_v0, %v2080_v41  ;;  %v2085_v23 = vrot.slane %v2471_v0, %v2084_v40 }
 0x4a0   : > { %v2088_v59 = vmul.f32 %v2081_v57, %v2703_v30  ;;  %v2089_v13 = vmul.f32 %v2085_v23, %v2706_v31  ;;  %v2090_v2 = vmul.f32 %v2081_v57, %v2709_v33  ;;  %v2091_v15 = vmul.f32 %v2085_v23, %v2712_v34 }
 0x4a1   : > { %v2092_v21 = vmul.f32 %v2081_v57, %v2715_v35  ;;  %v2093_v61 = vmul.f32 %v2085_v23, %v2718_v36  ;;  %v2094_v58 = vmul.f32 %v2081_v57, %v2725_v38  ;;  %v2095_v17 = vmul.f32 %v2085_v23, %v2728_v6 }
 0x4a2   : > { %2096 = vst [vmem:[%s292_s10] sm:$0xff] %v2088_v59  ;;  %2097 = vst [vmem:[%s292_s10 + $0x8] sm:$0xff] %v2089_v13 }
 0x4a3   : > { %2098 = vst [vmem:[%s292_s10 + $0x10] sm:$0xff] %v2090_v2  ;;  %2099 = vst [vmem:[%s292_s10 + $0x18] sm:$0xff] %v2091_v15 }
 0x4a4   : > { %2100 = vst [vmem:[%s292_s10 + $0x20] sm:$0xff] %v2092_v21  ;;  %2101 = vst [vmem:[%s292_s10 + $0x28] sm:$0xff] %v2093_v61 }
 0x4a5   : > { %2102 = vst [vmem:[%s292_s10 + $0x30] sm:$0xff] %v2094_v58  ;;  %2103 = vst [vmem:[%s292_s10 + $0x38] sm:$0xff] %v2095_v17 }
 0x4a6 PF: > { %s18_s24 = sadd.s32 1, %s2497_s24  }
 0x4a7   : > { %p15_p1 = scmp.ge.s32.totalorder %s18_s24, 4  }
 0x4a9   :  { %17 = sbr.rel (!%p15_p1) target bundleno = 5 (0x5), region = 90 }
 0x4ae   :  { %2125 = vsyncpa [#allocation4], 1 }
 0x4af   :  { %2127 = vsyncpa [#allocation4 + $0x1], 1 }

</bundles_post_ra>
